<compile_context>
chip_gen: v5e
topology: v5e:2x2
jax: 0.10.0
libtpu: 0.0.40
codegen_flags: <defaults>
</compile_context>

<pallas_src>
import functools

import jax
import jax.numpy as jnp
import numpy as np
from jax.experimental import pallas as pl
from jax.experimental.pallas import tpu as pltpu


def _round_up(x, m):
    return (x + m - 1) // m * m


def _basic_block_kernel(xh_ref, y_ref, phi_ref, vt_ref, B_ref, lam_ref,
                        xh_out_ref, vt_out_ref, *, one_over_m, n_over_m,
                        matmul_dtype):
    """One L-tile of the BasicBlock forward (all reductions are per-column)."""
    xh = xh_ref[...].astype(jnp.float32)                                  # (N, TL)

    # yh = Phi @ xh   (MXU, f32 accumulation)
    yh = jnp.dot(phi_ref[...], xh_ref[...].astype(matmul_dtype),
                 preferred_element_type=jnp.float32)                      # (M, TL)

    # xhl0 = mean over rows of (xh != 0);  bt = xhl0 * N/M   (per column)
    xhl0 = jnp.mean((xh != 0).astype(jnp.float32), axis=0, keepdims=True)
    bt = xhl0 * n_over_m                                                  # (1, TL)

    # Onsager-corrected residual: vt = y - yh + bt * vt
    vt_new = (y_ref[...].astype(jnp.float32) - yh
              + bt * vt_ref[...].astype(jnp.float32))                     # (M, TL)
    vt_out_ref[...] = vt_new.astype(vt_out_ref.dtype)

    # rvar = sum(vt**2, rows) / M   (per column)
    rvar = jnp.sum(vt_new * vt_new, axis=0, keepdims=True) * one_over_m   # (1, TL)

    # rh = xh + B @ vt
    rh = xh + jnp.dot(B_ref[...], vt_new.astype(matmul_dtype),
                      preferred_element_type=jnp.float32)                 # (N, TL)

    # shrink_lamp: theta = max(sqrt(rvar) * lam, 0)
    #   sign(rh) * max(|rh| - theta, 0)  ==  rh - clip(rh, -theta, theta)  (theta >= 0)
    theta = jnp.maximum(jnp.sqrt(rvar) * lam_ref[...], 0.0)               # (N, TL)
    xh_out_ref[...] = (rh - jnp.clip(rh, -theta, theta)).astype(xh_out_ref.dtype)


def _pick_tile(L, tl_max, min_steps=3):
    """Largest multiple of 128 dividing L (a multiple of 128), <= tl_max, that
    still gives >= min_steps grid steps; otherwise the largest divisor."""
    divisors = [t for t in range(128, L + 1, 128) if L % t == 0]
    capped = [t for t in divisors if t <= tl_max] or [min(divisors)]
    pipelined = [t for t in capped if L // t >= min_steps]
    return max(pipelined) if pipelined else max(capped)


def basic_block_forward(xh, y, Phi, OneOverM, NOverM, vt, B, lam, *,
                        tl_max=2048, min_grid_steps=3,
                        stream_dtype=jnp.float32, matmul_dtype=jnp.float32,
                        single_buffer_weights=True, donate_state=False):
    M, N = Phi.shape
    L = xh.shape[1]
    assert xh.shape == (N, L) and y.shape == (M, L) and vt.shape == (M, L)
    assert B.shape == (N, M) and lam.shape == (N, 1)

    f32 = jnp.float32
    out_dtype = f32                      # carried AMP state stays f32
    Phi_w = jnp.asarray(Phi, matmul_dtype)
    B_w = jnp.asarray(B, matmul_dtype)
    lam_f = jnp.asarray(lam, f32)

    # Ragged-L fallback: pad columns to a multiple of 128 (lane-dense stores),
    # slice the outputs back afterwards. Padded columns compute exact zeros.
    L_pad = _round_up(L, 128)
    def _prep(a, dt):
        a = jnp.asarray(a, dt)
        if L_pad != L:
            a = jnp.pad(a, ((0, 0), (0, L_pad - L)))
        return a
    xh_p = _prep(xh, stream_dtype)
    y_p = _prep(y, stream_dtype)
    vt_p = _prep(vt, stream_dtype)

    # ---- VMEM budgeting with real (lane/sublane padded) footprints ----------
    try:
        vmem_cap = int(pltpu.get_tpu_info().vmem_capacity_bytes)
    except Exception:
        vmem_cap = 64 * 1024 * 1024                                  # v7x floor
    w_item = jnp.dtype(matmul_dtype).itemsize
    s_item = jnp.dtype(stream_dtype).itemsize
    o_item = jnp.dtype(out_dtype).itemsize
    M8, N8 = _round_up(M, 8), _round_up(N, 8)
    weight_bufs = 1 if single_buffer_weights else 2
    resident = weight_bufs * (M8 * _round_up(N, 128) * w_item       # Phi
                              + N8 * _round_up(M, 128) * w_item     # B
                              + N8 * 128 * 4)                       # lam
    # Per-column streamed bytes, double-buffered (3 inputs + 2 outputs).
    per_col = 2 * ((N8 + 2 * M8) * s_item + (N8 + M8) * o_item)
    tl_budget = max(128, ((vmem_cap // 2 - resident) // max(per_col, 1)) // 128 * 128)

    TL = _pick_tile(L_pad, min(tl_max, tl_budget), min_grid_steps)
    grid = (L_pad // TL,)

    need = resident + per_col * TL
    vmem_limit = int(min(max(2 * need, 16 * 1024 * 1024), int(0.9 * vmem_cap)))

    cost = pl.CostEstimate(
        flops=int(4 * M * N * L_pad + 8 * (M + N) * L_pad),
        transcendentals=int(L_pad),
        bytes_accessed=int(s_item * (N + 2 * M) * L_pad
                           + o_item * (N + M) * L_pad
                           + w_item * 2 * M * N + 4 * N),
    )

    kernel = functools.partial(
        _basic_block_kernel,
        one_over_m=float(OneOverM), n_over_m=float(NOverM),
        matmul_dtype=matmul_dtype)

    out_shape = (jax.ShapeDtypeStruct((N, L_pad), out_dtype),
                 jax.ShapeDtypeStruct((M, L_pad), out_dtype))

    # Alias xh->xh_out, vt->vt_out only when shapes/dtypes match exactly.
    io_aliases = {}
    if donate_state and L_pad == L and stream_dtype == out_dtype:
        io_aliases = {0: 0, 3: 1}

    def _build_and_run(use_single_buffer):
        def resident_spec(shape):
            if use_single_buffer:
                return pl.BlockSpec(shape, lambda i: (0,) * len(shape),
                                    pipeline_mode=pl.Buffered(1))
            return pl.BlockSpec(shape, lambda i: (0,) * len(shape))

        grid_spec = pltpu.PrefetchScalarGridSpec(
            num_scalar_prefetch=0,
            grid=grid,
            in_specs=[
                pl.BlockSpec((N, TL), lambda i: (0, i)),   # xh   (streamed)
                pl.BlockSpec((M, TL), lambda i: (0, i)),   # y    (streamed)
                resident_spec((M, N)),                     # Phi  (resident)
                pl.BlockSpec((M, TL), lambda i: (0, i)),   # vt   (streamed)
                resident_spec((N, M)),                     # B    (resident)
                resident_spec((N, 1)),                     # lam  (resident)
            ],
            out_specs=(
                pl.BlockSpec((N, TL), lambda i: (0, i)),   # xh_out
                pl.BlockSpec((M, TL), lambda i: (0, i)),   # vt_out
            ),
        )
        return pl.pallas_call(
            kernel,
            out_shape=out_shape,
            grid_spec=grid_spec,
            compiler_params=pltpu.CompilerParams(
                dimension_semantics=("parallel",),         # L-tiles independent
                vmem_limit_bytes=vmem_limit),
            cost_estimate=cost,
            input_output_aliases=io_aliases,
        )(xh_p, y_p, Phi_w, vt_p, B_w, lam_f)

    if single_buffer_weights and hasattr(pl, "Buffered"):
        try:
            xh_out, vt_out = _build_and_run(True)
        except Exception:
            # Fallback: default double-buffering of the resident weights.
            xh_out, vt_out = _build_and_run(False)
    else:
        xh_out, vt_out = _build_and_run(False)

    if L_pad != L:
        xh_out = xh_out[:, :L]
        vt_out = vt_out[:, :L]
    return xh_out, vt_out


if __name__ == "__main__":
    key = jax.random.PRNGKey(0)
    # Small, lane-friendly shapes: L multiple of 128 (lane-dense stores),
    # M/N multiples of 8. Tile picker gives TL=128 -> 4 pipelined grid steps.
    M, N, L = 32, 64, 512
    k1, k2, k3, k4, k5 = jax.random.split(key, 5)

    Phi = jax.random.normal(k1, (M, N), dtype=jnp.float32)
    xh = jax.random.normal(k2, (N, L), dtype=jnp.float32)
    xh = xh * (jax.random.uniform(k3, (N, L)) > 0.5).astype(jnp.float32)  # sparsify
    y = jax.random.normal(k4, (M, L), dtype=jnp.float32)
    vt = jax.random.normal(k5, (M, L), dtype=jnp.float32)

    # Deterministic parameter init exactly as in BasicBlock.__init__
    spec_norm = float(np.linalg.norm(np.asarray(Phi), ord=2))   # largest singular value
    B = (Phi.T / (spec_norm ** 2)).astype(jnp.float32)          # (N, M)
    lam = jnp.ones((N, 1), dtype=jnp.float32) * 0.4             # (N, 1)

    OneOverM = 1.0 / M
    NOverM = float(N) / float(M)

    xh_new, vt_new = basic_block_forward(xh, y, Phi, OneOverM, NOverM, vt, B, lam)
    jax.block_until_ready((xh_new, vt_new))

    # Pure-JAX reference check
    yh = Phi @ xh
    xhl0 = jnp.mean((jnp.abs(xh) > 0).astype(jnp.float32), axis=0)
    bt = xhl0 * NOverM
    vt_ref = y - yh + bt * vt
    rvar = jnp.sum(vt_ref ** 2, axis=0) * OneOverM
    rh = xh + B @ vt_ref
    theta = jnp.maximum(jnp.sqrt(rvar) * lam, 0.0)
    xh_ref = jnp.sign(rh) * jnp.maximum(jnp.abs(rh) - theta, 0.0)

    assert jnp.allclose(vt_new, vt_ref, atol=1e-3, rtol=1e-3), \
        float(jnp.max(jnp.abs(vt_new - vt_ref)))
    assert jnp.allclose(xh_new, xh_ref, atol=1e-3, rtol=1e-3), \
        float(jnp.max(jnp.abs(xh_new - xh_ref)))
    print("KERNEL_OK")
</pallas_src>

<mosaic_0001>
module attributes {stable_mosaic.version = 11 : i64} {
  func.func @_basic_block_kernel(%arg0: i32, %arg1: memref<64x128xf32, #tpu.memory_space<vmem>>, %arg2: memref<32x128xf32, #tpu.memory_space<vmem>>, %arg3: memref<32x64xf32, #tpu.memory_space<vmem>>, %arg4: memref<32x128xf32, #tpu.memory_space<vmem>>, %arg5: memref<64x32xf32, #tpu.memory_space<vmem>>, %arg6: memref<64x1xf32, #tpu.memory_space<vmem>>, %arg7: memref<64x128xf32, #tpu.memory_space<vmem>>, %arg8: memref<32x128xf32, #tpu.memory_space<vmem>>) attributes {dimension_semantics = [#tpu.dimension_semantics<parallel>], iteration_bounds = array<i64: 4>, scalar_prefetch = 0 : i64, scratch_operands = 0 : i64, tpu.core_type = #tpu.core_type<tc>, window_params = [{transform_indices = @transform_0, window_bounds = array<i64: 64, 128>}, {transform_indices = @transform_1, window_bounds = array<i64: 32, 128>}, {pipeline_mode = #tpu.pipeline_mode<synchronous>, transform_indices = @transform_2, window_bounds = array<i64: 32, 64>}, {transform_indices = @transform_3, window_bounds = array<i64: 32, 128>}, {pipeline_mode = #tpu.pipeline_mode<synchronous>, transform_indices = @transform_4, window_bounds = array<i64: 64, 32>}, {pipeline_mode = #tpu.pipeline_mode<synchronous>, transform_indices = @transform_5, window_bounds = array<i64: 64, 1>}, {transform_indices = @transform_6, window_bounds = array<i64: 64, 128>}, {transform_indices = @transform_7, window_bounds = array<i64: 32, 128>}]} {
    %c0 = arith.constant 0 : index
    %c0_0 = arith.constant 0 : index
    %0 = vector.load %arg1[%c0, %c0_0] : memref<64x128xf32, #tpu.memory_space<vmem>>, vector<64x128xf32>
    %c0_1 = arith.constant 0 : index
    %c0_2 = arith.constant 0 : index
    %1 = vector.load %arg3[%c0_1, %c0_2] : memref<32x64xf32, #tpu.memory_space<vmem>>, vector<32x64xf32>
    %c0_3 = arith.constant 0 : index
    %c0_4 = arith.constant 0 : index
    %2 = vector.load %arg1[%c0_3, %c0_4] : memref<64x128xf32, #tpu.memory_space<vmem>>, vector<64x128xf32>
    %cst = arith.constant dense<0.000000e+00> : vector<32x128xf32>
    %3 = tpu.matmul %1, %2, %cst {dimension_numbers = #tpu.dot_dimension_numbers<[1], [0], [0], [1], [0, 0, 1, 1], [], []>} : vector<32x64xf32>, vector<64x128xf32>, vector<32x128xf32> -> vector<32x128xf32>
    %cst_5 = arith.constant 0.000000e+00 : f32
    %4 = vector.broadcast %cst_5 : f32 to vector<64x128xf32>
    %5 = arith.cmpf one, %0, %4 : vector<64x128xf32>
    %6 = arith.extui %5 : vector<64x128xi1> to vector<64x128xi32>
    %7 = arith.sitofp %6 : vector<64x128xi32> to vector<64x128xf32>
    %cst_6 = arith.constant dense<0.000000e+00> : vector<128xf32>
    %8 = vector.multi_reduction <add>, %7, %cst_6 [0] : vector<64x128xf32> to vector<128xf32>
    %9 = vector.shape_cast %8 : vector<128xf32> to vector<1x128xf32>
    %cst_7 = arith.constant 6.400000e+01 : f32
    %10 = vector.broadcast %cst_7 : f32 to vector<1x128xf32>
    %11 = arith.divf %9, %10 : vector<1x128xf32>
    %cst_8 = arith.constant 2.000000e+00 : f32
    %12 = vector.broadcast %cst_8 : f32 to vector<1x128xf32>
    %13 = arith.mulf %11, %12 : vector<1x128xf32>
    %c0_9 = arith.constant 0 : index
    %c0_10 = arith.constant 0 : index
    %14 = vector.load %arg2[%c0_9, %c0_10] : memref<32x128xf32, #tpu.memory_space<vmem>>, vector<32x128xf32>
    %15 = arith.subf %14, %3 : vector<32x128xf32>
    %c0_11 = arith.constant 0 : index
    %c0_12 = arith.constant 0 : index
    %16 = vector.load %arg4[%c0_11, %c0_12] : memref<32x128xf32, #tpu.memory_space<vmem>>, vector<32x128xf32>
    %17 = vector.broadcast %13 : vector<1x128xf32> to vector<32x128xf32>
    %18 = arith.mulf %17, %16 : vector<32x128xf32>
    %19 = arith.addf %15, %18 : vector<32x128xf32>
    %c0_13 = arith.constant 0 : index
    %c0_14 = arith.constant 0 : index
    %20 = vector.load %arg8[%c0_13, %c0_14] : memref<32x128xf32, #tpu.memory_space<vmem>>, vector<32x128xf32>
    tpu.vector_store %arg8[%c0_13, %c0_14], %19 {strides = array<i32>} : memref<32x128xf32, #tpu.memory_space<vmem>>, vector<32x128xf32>,
    %21 = arith.mulf %19, %19 : vector<32x128xf32>
    %cst_15 = arith.constant dense<0.000000e+00> : vector<128xf32>
    %22 = vector.multi_reduction <add>, %21, %cst_15 [0] : vector<32x128xf32> to vector<128xf32>
    %23 = vector.shape_cast %22 : vector<128xf32> to vector<1x128xf32>
    %cst_16 = arith.constant 3.125000e-02 : f32
    %24 = vector.broadcast %cst_16 : f32 to vector<1x128xf32>
    %25 = arith.mulf %23, %24 : vector<1x128xf32>
    %c0_17 = arith.constant 0 : index
    %c0_18 = arith.constant 0 : index
    %26 = vector.load %arg5[%c0_17, %c0_18] : memref<64x32xf32, #tpu.memory_space<vmem>>, vector<64x32xf32>
    %cst_19 = arith.constant dense<0.000000e+00> : vector<64x128xf32>
    %27 = tpu.matmul %26, %19, %cst_19 {dimension_numbers = #tpu.dot_dimension_numbers<[1], [0], [0], [1], [0, 0, 1, 1], [], []>} : vector<64x32xf32>, vector<32x128xf32>, vector<64x128xf32> -> vector<64x128xf32>
    %28 = arith.addf %0, %27 : vector<64x128xf32>
    %29 = math.sqrt %25 : vector<1x128xf32>
    %c0_20 = arith.constant 0 : index
    %c0_21 = arith.constant 0 : index
    %30 = vector.load %arg6[%c0_20, %c0_21] : memref<64x1xf32, #tpu.memory_space<vmem>>, vector<64x1xf32>
    %31 = vector.broadcast %29 : vector<1x128xf32> to vector<64x128xf32>
    %32 = vector.broadcast %30 : vector<64x1xf32> to vector<64x128xf32>
    %33 = arith.mulf %31, %32 : vector<64x128xf32>
    %cst_22 = arith.constant 0.000000e+00 : f32
    %34 = vector.broadcast %cst_22 : f32 to vector<64x128xf32>
    %35 = arith.maximumf %33, %34 : vector<64x128xf32>
    %cst_23 = arith.constant 0.000000e+00 : f32
    %36 = vector.broadcast %cst_23 : f32 to vector<64x128xf32>
    %37 = arith.subf %36, %35 : vector<64x128xf32>
    %38 = arith.maximumf %37, %28 : vector<64x128xf32>
    %39 = arith.minimumf %35, %38 : vector<64x128xf32>
    %40 = arith.subf %28, %39 : vector<64x128xf32>
    %c0_24 = arith.constant 0 : index
    %c0_25 = arith.constant 0 : index
    %41 = vector.load %arg7[%c0_24, %c0_25] : memref<64x128xf32, #tpu.memory_space<vmem>>, vector<64x128xf32>
    tpu.vector_store %arg7[%c0_24, %c0_25], %40 {strides = array<i32>} : memref<64x128xf32, #tpu.memory_space<vmem>>, vector<64x128xf32>,
    return
  }
  func.func @transform_0(%arg0: i32) -> (i32, i32) {
    %c0_i32 = arith.constant 0 : i32
    %c0_i32_0 = arith.constant 0 : i32
    return %c0_i32, %arg0 : i32, i32
  }
  func.func @transform_1(%arg0: i32) -> (i32, i32) {
    %c0_i32 = arith.constant 0 : i32
    %c0_i32_0 = arith.constant 0 : i32
    return %c0_i32, %arg0 : i32, i32
  }
  func.func @transform_2(%arg0: i32) -> (i32, i32) {
    %c0_i32 = arith.constant 0 : i32
    %c0_i32_0 = arith.constant 0 : i32
    %c0_i32_1 = arith.constant 0 : i32
    return %c0_i32, %c0_i32_0 : i32, i32
  }
  func.func @transform_3(%arg0: i32) -> (i32, i32) {
    %c0_i32 = arith.constant 0 : i32
    %c0_i32_0 = arith.constant 0 : i32
    return %c0_i32, %arg0 : i32, i32
  }
  func.func @transform_4(%arg0: i32) -> (i32, i32) {
    %c0_i32 = arith.constant 0 : i32
    %c0_i32_0 = arith.constant 0 : i32
    %c0_i32_1 = arith.constant 0 : i32
    return %c0_i32, %c0_i32_0 : i32, i32
  }
  func.func @transform_5(%arg0: i32) -> (i32, i32) {
    %c0_i32 = arith.constant 0 : i32
    %c0_i32_0 = arith.constant 0 : i32
    %c0_i32_1 = arith.constant 0 : i32
    return %c0_i32, %c0_i32_0 : i32, i32
  }
  func.func @transform_6(%arg0: i32) -> (i32, i32) {
    %c0_i32 = arith.constant 0 : i32
    %c0_i32_0 = arith.constant 0 : i32
    return %c0_i32, %arg0 : i32, i32
  }
  func.func @transform_7(%arg0: i32) -> (i32, i32) {
    %c0_i32 = arith.constant 0 : i32
    %c0_i32_0 = arith.constant 0 : i32
    return %c0_i32, %arg0 : i32, i32
  }
}

module attributes {stable_mosaic.version = 11 : i64} {
  func.func @_basic_block_kernel(%arg0: i32, %arg1: memref<64x128xf32, #tpu.memory_space<vmem>>, %arg2: memref<32x128xf32, #tpu.memory_space<vmem>>, %arg3: memref<32x64xf32, #tpu.memory_space<vmem>>, %arg4: memref<32x128xf32, #tpu.memory_space<vmem>>, %arg5: memref<64x32xf32, #tpu.memory_space<vmem>>, %arg6: memref<64x1xf32, #tpu.memory_space<vmem>>, %arg7: memref<64x128xf32, #tpu.memory_space<vmem>>, %arg8: memref<32x128xf32, #tpu.memory_space<vmem>>) attributes {dimension_semantics = [#tpu.dimension_semantics<parallel>], iteration_bounds = array<i64: 4>, scalar_prefetch = 0 : i64, scratch_operands = 0 : i64, tpu.core_type = #tpu.core_type<tc>, window_params = [{transform_indices = @transform_0, window_bounds = array<i64: 64, 128>}, {transform_indices = @transform_1, window_bounds = array<i64: 32, 128>}, {pipeline_mode = #tpu.pipeline_mode<synchronous>, transform_indices = @transform_2, window_bounds = array<i64: 32, 64>}, {transform_indices = @transform_3, window_bounds = array<i64: 32, 128>}, {pipeline_mode = #tpu.pipeline_mode<synchronous>, transform_indices = @transform_4, window_bounds = array<i64: 64, 32>}, {pipeline_mode = #tpu.pipeline_mode<synchronous>, transform_indices = @transform_5, window_bounds = array<i64: 64, 1>}, {transform_indices = @transform_6, window_bounds = array<i64: 64, 128>}, {transform_indices = @transform_7, window_bounds = array<i64: 32, 128>}]} {
    %c0 = arith.constant 0 : index
    %c0_0 = arith.constant 0 : index
    %0 = vector.load %arg1[%c0, %c0_0] : memref<64x128xf32, #tpu.memory_space<vmem>>, vector<64x128xf32>
    %c0_1 = arith.constant 0 : index
    %c0_2 = arith.constant 0 : index
    %1 = vector.load %arg3[%c0_1, %c0_2] : memref<32x64xf32, #tpu.memory_space<vmem>>, vector<32x64xf32>
    %c0_3 = arith.constant 0 : index
    %c0_4 = arith.constant 0 : index
    %2 = vector.load %arg1[%c0_3, %c0_4] : memref<64x128xf32, #tpu.memory_space<vmem>>, vector<64x128xf32>
    %cst = arith.constant dense<0.000000e+00> : vector<32x128xf32>
    %3 = tpu.matmul %1, %2, %cst {dimension_numbers = #tpu.dot_dimension_numbers<[1], [0], [0], [1], [0, 0, 1, 1], [], []>} : vector<32x64xf32>, vector<64x128xf32>, vector<32x128xf32> -> vector<32x128xf32>
    %cst_5 = arith.constant 0.000000e+00 : f32
    %4 = vector.broadcast %cst_5 : f32 to vector<64x128xf32>
    %5 = arith.cmpf one, %0, %4 : vector<64x128xf32>
    %6 = arith.extui %5 : vector<64x128xi1> to vector<64x128xi32>
    %7 = arith.sitofp %6 : vector<64x128xi32> to vector<64x128xf32>
    %cst_6 = arith.constant dense<0.000000e+00> : vector<128xf32>
    %8 = vector.multi_reduction <add>, %7, %cst_6 [0] : vector<64x128xf32> to vector<128xf32>
    %9 = vector.shape_cast %8 : vector<128xf32> to vector<1x128xf32>
    %cst_7 = arith.constant 6.400000e+01 : f32
    %10 = vector.broadcast %cst_7 : f32 to vector<1x128xf32>
    %11 = arith.divf %9, %10 : vector<1x128xf32>
    %cst_8 = arith.constant 2.000000e+00 : f32
    %12 = vector.broadcast %cst_8 : f32 to vector<1x128xf32>
    %13 = arith.mulf %11, %12 : vector<1x128xf32>
    %c0_9 = arith.constant 0 : index
    %c0_10 = arith.constant 0 : index
    %14 = vector.load %arg2[%c0_9, %c0_10] : memref<32x128xf32, #tpu.memory_space<vmem>>, vector<32x128xf32>
    %15 = arith.subf %14, %3 : vector<32x128xf32>
    %c0_11 = arith.constant 0 : index
    %c0_12 = arith.constant 0 : index
    %16 = vector.load %arg4[%c0_11, %c0_12] : memref<32x128xf32, #tpu.memory_space<vmem>>, vector<32x128xf32>
    %17 = vector.broadcast %13 : vector<1x128xf32> to vector<32x128xf32>
    %18 = arith.mulf %17, %16 : vector<32x128xf32>
    %19 = arith.addf %15, %18 : vector<32x128xf32>
    %c0_13 = arith.constant 0 : index
    %c0_14 = arith.constant 0 : index
    %20 = vector.load %arg8[%c0_13, %c0_14] : memref<32x128xf32, #tpu.memory_space<vmem>>, vector<32x128xf32>
    tpu.vector_store %arg8[%c0_13, %c0_14], %19 {strides = array<i32>} : memref<32x128xf32, #tpu.memory_space<vmem>>, vector<32x128xf32>,
    %21 = arith.mulf %19, %19 : vector<32x128xf32>
    %cst_15 = arith.constant dense<0.000000e+00> : vector<128xf32>
    %22 = vector.multi_reduction <add>, %21, %cst_15 [0] : vector<32x128xf32> to vector<128xf32>
    %23 = vector.shape_cast %22 : vector<128xf32> to vector<1x128xf32>
    %cst_16 = arith.constant 3.125000e-02 : f32
    %24 = vector.broadcast %cst_16 : f32 to vector<1x128xf32>
    %25 = arith.mulf %23, %24 : vector<1x128xf32>
    %c0_17 = arith.constant 0 : index
    %c0_18 = arith.constant 0 : index
    %26 = vector.load %arg5[%c0_17, %c0_18] : memref<64x32xf32, #tpu.memory_space<vmem>>, vector<64x32xf32>
    %cst_19 = arith.constant dense<0.000000e+00> : vector<64x128xf32>
    %27 = tpu.matmul %26, %19, %cst_19 {dimension_numbers = #tpu.dot_dimension_numbers<[1], [0], [0], [1], [0, 0, 1, 1], [], []>} : vector<64x32xf32>, vector<32x128xf32>, vector<64x128xf32> -> vector<64x128xf32>
    %28 = arith.addf %0, %27 : vector<64x128xf32>
    %29 = math.sqrt %25 : vector<1x128xf32>
    %c0_20 = arith.constant 0 : index
    %c0_21 = arith.constant 0 : index
    %30 = vector.load %arg6[%c0_20, %c0_21] : memref<64x1xf32, #tpu.memory_space<vmem>>, vector<64x1xf32>
    %31 = vector.broadcast %29 : vector<1x128xf32> to vector<64x128xf32>
    %32 = vector.broadcast %30 : vector<64x1xf32> to vector<64x128xf32>
    %33 = arith.mulf %31, %32 : vector<64x128xf32>
    %cst_22 = arith.constant 0.000000e+00 : f32
    %34 = vector.broadcast %cst_22 : f32 to vector<64x128xf32>
    %35 = arith.maximumf %33, %34 : vector<64x128xf32>
    %cst_23 = arith.constant 0.000000e+00 : f32
    %36 = vector.broadcast %cst_23 : f32 to vector<64x128xf32>
    %37 = arith.subf %36, %35 : vector<64x128xf32>
    %38 = arith.maximumf %37, %28 : vector<64x128xf32>
    %39 = arith.minimumf %35, %38 : vector<64x128xf32>
    %40 = arith.subf %28, %39 : vector<64x128xf32>
    %c0_24 = arith.constant 0 : index
    %c0_25 = arith.constant 0 : index
    %41 = vector.load %arg7[%c0_24, %c0_25] : memref<64x128xf32, #tpu.memory_space<vmem>>, vector<64x128xf32>
    tpu.vector_store %arg7[%c0_24, %c0_25], %40 {strides = array<i32>} : memref<64x128xf32, #tpu.memory_space<vmem>>, vector<64x128xf32>,
    return
  }
  func.func @transform_0(%arg0: i32) -> (i32, i32) {
    %c0_i32 = arith.constant 0 : i32
    %c0_i32_0 = arith.constant 0 : i32
    return %c0_i32, %arg0 : i32, i32
  }
  func.func @transform_1(%arg0: i32) -> (i32, i32) {
    %c0_i32 = arith.constant 0 : i32
    %c0_i32_0 = arith.constant 0 : i32
    return %c0_i32, %arg0 : i32, i32
  }
  func.func @transform_2(%arg0: i32) -> (i32, i32) {
    %c0_i32 = arith.constant 0 : i32
    %c0_i32_0 = arith.constant 0 : i32
    %c0_i32_1 = arith.constant 0 : i32
    return %c0_i32, %c0_i32_0 : i32, i32
  }
  func.func @transform_3(%arg0: i32) -> (i32, i32) {
    %c0_i32 = arith.constant 0 : i32
    %c0_i32_0 = arith.constant 0 : i32
    return %c0_i32, %arg0 : i32, i32
  }
  func.func @transform_4(%arg0: i32) -> (i32, i32) {
    %c0_i32 = arith.constant 0 : i32
    %c0_i32_0 = arith.constant 0 : i32
    %c0_i32_1 = arith.constant 0 : i32
    return %c0_i32, %c0_i32_0 : i32, i32
  }
  func.func @transform_5(%arg0: i32) -> (i32, i32) {
    %c0_i32 = arith.constant 0 : i32
    %c0_i32_0 = arith.constant 0 : i32
    %c0_i32_1 = arith.constant 0 : i32
    return %c0_i32, %c0_i32_0 : i32, i32
  }
  func.func @transform_6(%arg0: i32) -> (i32, i32) {
    %c0_i32 = arith.constant 0 : i32
    %c0_i32_0 = arith.constant 0 : i32
    return %c0_i32, %arg0 : i32, i32
  }
  func.func @transform_7(%arg0: i32) -> (i32, i32) {
    %c0_i32 = arith.constant 0 : i32
    %c0_i32_0 = arith.constant 0 : i32
    return %c0_i32, %arg0 : i32, i32
  }
}

</mosaic_0001>

<bundles_post_ra>
// kernel: tpu_custom_call.1
= control target key start
LH: loop header
LB: loop body
LE: loop exit
PB: predicated region body
PF: predicated region fallthrough
CT: control target
= control target key end

     0   :  { %13 = vsyncpa [#allocation3], 0  ;;  %s1626_s0 = inlined_call_operand.hbm [shape: f32[64,512], index: 0, kind: input, shape index: {}]   ;;  %s1627_s1 = inlined_call_operand.vmem [shape: f32[32,512], index: 1, kind: input, shape index: {}]   ;;  %s1628_s2 = inlined_call_operand.vmem [shape: f32[32,64], index: 2, kind: input, shape index: {}]   ;;  %s1629_s3 = inlined_call_operand.hbm [shape: f32[32,512], index: 3, kind: input, shape index: {}]   ;;  %s1630_s4 = inlined_call_operand.vmem [shape: f32[64,32], index: 4, kind: input, shape index: {}]   ;;  %s1631_s5 = inlined_call_operand.vmem [shape: f32[64,1], index: 5, kind: input, shape index: {}]   ;;  %s1632_s6 = inlined_call_operand.hbm [shape: f32[64,512], index: 6, kind: output, shape index: {0}]   ;;  %s1633_s7 = inlined_call_operand.hbm [shape: f32[32,512], index: 7, kind: output, shape index: {1}]  }
   0x1   :  { %15 = vsyncpa [#allocation3 + $0x1], 0 }
   0x2   :  { %16 = vsyncpa [#allocation7], 0 }
   0x3   :  { %18 = vsyncpa [#allocation7 + $0x1], 0 }
   0x4   :  { %19 = vsyncpa [#allocation4], 0 }
   0x5   :  { %21 = vsyncpa [#allocation4 + $0x1], 0 }
   0x6   :  { %22 = vsyncpa [#allocation10], 0 }
   0x7   :  { %24 = vsyncpa [#allocation10 + $0x1], 0  ;;  %s1266_s24 = smov 0   ;;  %s1268_s25 = smov 0  }
   0x8   :  { %s1270_s26 = smov 0   ;;  %s1272_s27 = smov 0  }
   0x9 LB: > { %1641 = sst [smem:[#allocation15_spill]] %s1211_s26  ;;  %s1287_s28 = sadd.s32 4294967295, %s1215_s27   ;;  %s1215_s27 = sphi %s1272_s27, %s1653_s27   ;;  %s1211_s26 = sphi %s1270_s26, %s1655_s26   ;;  %s1207_s25 = sphi %s1268_s25, %s1657_s25   ;;  %s1203_s24 = sphi %s1266_s24, %s1656_s24  }
   0xa   : > { %s936_s29 = sadd.s32 4294967294, %s1215_s27   ;;  %s1291_s30 = sadd.s32 1, %s1215_s27  }
   0xb   : > { %1642 = sst [smem:[#allocation16_spill]] %s1291_s30  ;;  %s37_s8 = sadd.s32 1, %s1211_s26 }
   0xc   : > { %s34_s9 = ssub.s32 %s1215_s27, %s1291_s30  ;;  %p44_p0 = scmp.ne.s32.totalorder %s1211_s26, %s1207_s25 }
   0xd   : > { %p35_p1 = scmp.eq.s32.totalorder %s34_s9, 0  ;;  %p45_p2 = scmp.eq.s32.totalorder %s1215_s27, 0 }
   0xe   : > { %p50_p3 = scmp.ne.s32.totalorder %s1207_s25, %s1203_s24  ;;  %p51_p4 = scmp.eq.s32.totalorder %s1287_s28, 0 }
   0xf   : > { %s1303_s10 = scalar_select %p35_p1, %s1211_s26, %s37_s8  }
  0x10   : > { %p1305_p5 = por %p45_p2, %p44_p0  ;;  %p1309_p6 = por %p51_p4, %p50_p3 }
  0x11   : > { %1643 = sst [smem:[#allocation17_spill]] %s1303_s10  ;;  %p189_p7 = scmp.eq.s32.totalorder %s1287_s28, 3 }
  0x12   : > { %p195_p8 = scmp.eq.s32.totalorder %s936_s29, 3  ;;  %p938_p11 = scmp.ge.s32.totalorder %s1215_s27, 4 }
  0x13   : > { %p1314_p9 = por %p189_p7, %p44_p0  ;;  %s1324_s15 = sand.u32 (!%p938_p11), 1, %s1211_s26  }
  0x14   : > { %p1318_p10 = por %p195_p8, %p50_p3  ;;  %246 = sbr.rel (%p938_p11) target bundleno = 63 (0x3f), region = 28 }
  0x15   : > { %s1327_s16 = sshll.u32 (!%p938_p11), %s1215_s27, 3  ;;  %s939_s17 = sshll.u32 (!%p938_p11), %s1324_s15, 6 }
  0x16   : > { %s1647_s14 = scalar_select %p1318_p10, 1, 0 }
  0x17   : > { %s258_s20 = scalar_lea.hbm (!%p938_p11), %s1626_s0, %s1327_s16  ;;  %s254_s22 = scalar_lea.vmem (!%p938_p11), [#allocation2], %s939_s17 }
  0x18   : > { %1648 = sst [smem:[#allocation18_spill]] %s1647_s14  ;;  %s259_s21 = sshll.u32 (!%p938_p11), %s258_s20, 4  ;;  %s260_s21 = int_to_ptr.hbm [resolvable:$true] %s259_s21 }
  0x19   : > { %s261_s23 = sshll.u32 %s254_s22, 4  ;;  %s251_s29 = scalar_lea.sflag [#allocation3], %s1324_s15  ;;  %s262_s23 = int_to_ptr.vmem [resolvable:$true] %s261_s23 }
  0x1a   : > { %s1057_s8 = sshra.s32 %s260_s21, 4  ;;  %s1063_s30 = scalar_lea.hbm %s1626_s0, 256  ;;  %s1058_s8 = int_to_ptr.hbm [resolvable:$true] %s1057_s8 }
  0x1b   : > { %s1059_s9 = scalar_lea.hbm %s1058_s8, 64  ;;  %p1064_p1 = scmp.lt.s32.totalorder %s1058_s8, %s1626_s0 }
  0x1c   : > { %p1060_p12 = scmp.ne.s32.totalorder %s1058_s8, %s1059_s9  ;;  %p1065_p2 = scmp.lt.s32.totalorder %s1063_s30, %s1059_s9 }
  0x1e   : > { %p1061_p13 = pnand %p1060_p12, %p1305_p5  ;;  %p1066_p3 = por %p1065_p2, %p1064_p1 }
  0x20   : > { %p1062_p0 = pneg %p1061_p13 }
  0x22   : > { %p1067_p4 = pnand %p1066_p3, %p1062_p0 }
  0x24   : > { %1070 = shalt.err (!%p1067_p4)
}
  0x25   : > { %s1638_s17 = smov 512   ;;  %s1639_s19 = smov 128  }
  0x26   : > { %s1640_s20 = smov 8   ;;  %270 = sbr.rel (!%p1305_p5) target bundleno = 46 (0x2e), region = 36 }
  0x27   : > { %993 = dma.hbm_to_vmem [thread:$0]  (%p1305_p5), %s260_s21, 1024, %s262_s23, %s251_s29, %s1638_s17, %s1639_s19, %s1640_s20  }
  0x28   : > { %s941_s26 = sshll.u32 (%p1305_p5), %s1324_s15, 5  ;;  %s276_s14 = scalar_lea.vmem (%p1305_p5), %s1627_s1, %s1327_s16 }
  0x29   : > { %v311_v0 = vld [vmem:[%s276_s14] sm:$0xff] (%p1305_p5)  ;;  %s274_s22 = scalar_lea.vmem (%p1305_p5), [#allocation5], %s941_s26 }
  0x2a   : > { %v313_v1 = vld [vmem:[%s276_s14 + $0x20] sm:$0xff] (%p1305_p5)  ;;  %312 = vst [vmem:[%s274_s22] sm:$0xff] (%p1305_p5), %v311_v0 }
  0x2b   : > { %v315_v2 = vld [vmem:[%s276_s14 + $0x40] sm:$0xff]  ;;  %314 = vst [vmem:[%s274_s22 + $0x8] sm:$0xff] %v313_v1 }
  0x2c   : > { %v317_v3 = vld [vmem:[%s276_s14 + $0x60] sm:$0xff]  ;;  %316 = vst [vmem:[%s274_s22 + $0x10] sm:$0xff] %v315_v2 }
  0x2d   : > { %318 = vst [vmem:[%s274_s22 + $0x18] sm:$0xff] %v317_v3 }
  0x2e PF: > { %s943_s21 = sshll.u32 %s1324_s15, 5  ;;  %s333_s8 = scalar_lea.hbm %s1629_s3, %s1327_s16 }
  0x2f   : > { %s334_s9 = sshll.u32 %s333_s8, 4  ;;  %s329_s18 = scalar_lea.vmem [#allocation6], %s943_s21  ;;  %s335_s9 = int_to_ptr.hbm [resolvable:$true] %s334_s9 }
  0x30   : > { %s336_s10 = sshll.u32 %s329_s18, 4  ;;  %s326_s26 = scalar_lea.sflag [#allocation7], %s1324_s15  ;;  %s337_s10 = int_to_ptr.vmem [resolvable:$true] %s336_s10 }
  0x31   : > { %s1085_s30 = sshra.s32 %s335_s9, 4  ;;  %s1091_s19 = scalar_lea.hbm %s1629_s3, 128  ;;  %s1086_s30 = int_to_ptr.hbm [resolvable:$true] %s1085_s30 }
  0x32   : > { %s1087_s14 = scalar_lea.hbm %s1086_s30, 32  ;;  %p1092_p12 = scmp.lt.s32.totalorder %s1086_s30, %s1629_s3 }
  0x33   : > { %p1088_p7 = scmp.ne.s32.totalorder %s1086_s30, %s1087_s14  ;;  %p1093_p13 = scmp.lt.s32.totalorder %s1091_s19, %s1087_s14 }
  0x35   : > { %p1089_p8 = pnand %p1088_p7, %p1305_p5  ;;  %p1094_p0 = por %p1093_p13, %p1092_p12 }
  0x37   : > { %p1090_p11 = pneg %p1089_p8 }
  0x39   : > { %p1095_p1 = pnand %p1094_p0, %p1090_p11 }
  0x3b   : > { %1098 = shalt.err (!%p1095_p1)
}
  0x3c   : > { %s1649_s15 = smov 8   ;;  %s1650_s16 = smov 128  }
  0x3d   : > { %s1651_s21 = smov 512  }
  0x3e   : > { %994 = dma.hbm_to_vmem [thread:$0]  (%p1305_p5), %s335_s9, 512, %s337_s10, %s326_s26, %s1651_s21, %s1650_s16, %s1649_s15  }
  0x3f PF: > { %p945_p2 = scmp.ge.s32.totalorder %s1215_s27, 1  ;;  %p344_p3 = scmp.lt.s32.totalorder %s1215_s27, 5 }
  0x41   : > { %p345_p4 = pnand %p945_p2, %p344_p3 }
  0x42   : > { %s1377_s17 = sand.u32 (!%p345_p4), 1, %s1207_s25  }
  0x43   : > { %348 = sbr.rel (%p345_p4) target bundleno = 419 (0x1a3), region = 78  ;;  %s946_s19 = sshll.u32 (!%p345_p4), %s1377_s17, 6 }
  0x44   : > { %s351_s11 = scalar_lea.sflag (!%p345_p4), [#allocation3], %s1377_s17  ;;  %s1383_s20 = scalar_lea.vmem (!%p345_p4), [#allocation2], %s946_s19 }
  0x48   : > { %1186 = dma.done.wait (%p1309_p6), %s351_s11, 1024  }
  0x49   : > { %1188 = vsyncadd (%p1309_p6), %s351_s11, 4294966272  ;;  %s1390_s29 = sshll.u32 %s1377_s17, 5  ;;  %s368_s9 = scalar_lea.sflag [#allocation7], %s1377_s17 }
  0x4a   : > { %s1393_s8 = scalar_lea.vmem [#allocation5], %s1390_s29  ;;  %s1397_s18 = scalar_lea.vmem [#allocation6], %s1390_s29 }
  0x4b   : > { %1190 = dma.done.wait (%p1309_p6), %s368_s9, 512  }
  0x4c   : > { %1192 = vsyncadd (%p1309_p6), %s368_s9, 4294966784  ;;  %v1404_v4 = vld [vmem:[%s1383_s20 + $0x38] sm:$0xff]  ;;  %v1407_v5 = vld [vmem:[%s1383_s20 + $0x30] sm:$0xff]  ;;  %v1220_v7 = vmov 0   ;;  %vm429_vm0 = vcmask 523264   ;;  %v1221_v25 = vmov 0.0  }
  0x4d   : > { %977 = vmatpush.msra.mxu3 %v1404_v4  ;;  %450 = vmatpush.msra.mxu0 %v1404_v4  ;;  %v1412_v6 = vld [vmem:[%s1383_s20 + $0x28] sm:$0xff]  ;;  %v1417_v8 = vld [vmem:[%s1383_s20 + $0x20] sm:$0xff]  ;;  %v651_v9 = vld [vmem:[%s1631_s5 + $0x10] sm:$0xff]  ;;  %vm477_vm7 = vcmp.ne.f32.partialorder %v1407_v5, 0.0  ;;  %vm478_vm8 = vcmp.ne.f32.partialorder %v1404_v4, 0.0  ;;  %v1222_v41 = vmov 64.0  }
  0x4e   : > { %1051 = vset.pattern.permute.xlu1 %v1220_v7  ;;  %1050 = vset.pattern.permute.xlu0 %v1220_v7  ;;  %v649_v10 = vld [vmem:[%s1631_s5] sm:$0xff]  ;;  %v1428_v11 = vld [vmem:[%s1383_s20 + $0x18] sm:$0xff]  ;;  %v1436_v13 = vld [vmem:[%s1383_s20 + $0x10] sm:$0xff]  ;;  %vm475_vm5 = vcmp.ne.f32.partialorder %v1417_v8, 0.0  ;;  %vm476_vm6 = vcmp.ne.f32.partialorder %v1412_v6, 0.0  ;;  %v961_v37 = vsel %vm477_vm7, 1.0, %v1221_v25  ;;  %1053 = vrcp.f32 %v1222_v41 }
  0x4f   : > { %978 = vmatpush.msra.mxu3 %v1407_v5  ;;  %451 = vmatpush.msra.mxu0 %v1407_v5  ;;  %v653_v12 = vld [vmem:[%s1631_s5 + $0x20] sm:$0xff]  ;;  %v1441_v14 = vld [vmem:[%s1383_s20 + $0x8] sm:$0xff]  ;;  %v652_v15 = vld [vmem:[%s1631_s5 + $0x18] sm:$0xff]  ;;  %vm473_vm3 = vcmp.ne.f32.partialorder %v1436_v13, 0.0  ;;  %vm474_vm4 = vcmp.ne.f32.partialorder %v1428_v11, 0.0  ;;  %v959_v33 = vsel %vm475_vm5, 1.0, %v1221_v25 }
  0x50   : > { %1052 = vset.pattern.permute.xlu2 %v1220_v7  ;;  %669 = vperm.xlu1 %1051, %v651_v9   ;;  %v650_v16 = vld [vmem:[%s1631_s5 + $0x8] sm:$0xff]  ;;  %v1452_v17 = vld [vmem:[%s1383_s20] sm:$0xff]  ;;  %v656_v21 = vld [vmem:[%s1631_s5 + $0x38] sm:$0xff]  ;;  %vm472_vm1 = vcmp.ne.f32.partialorder %v1441_v14, 0.0  ;;  %v957_v29 = vsel %vm473_vm3, 1.0, %v1221_v25  ;;  %v958_v31 = vsel %vm474_vm4, 1.0, %v1221_v25 }
  0x51   : > { %979 = vmatpush.msra.mxu3 %v1412_v6  ;;  %452 = vmatpush.msra.mxu0 %v1412_v6  ;;  %v426_v18 = vld [vmem:[%s1628_s2 + $0x8] sm:$0xff]  ;;  %v425_v19 = vld [vmem:[%s1628_s2] sm:$0xff]  ;;  %v655_v22 = vld [vmem:[%s1631_s5 + $0x30] sm:$0xff]  ;;  %vm471_vm2 = vcmp.ne.f32.partialorder %v1452_v17, 0.0  ;;  %v956_v26 = vsel %vm472_vm1, 1.0, %v1221_v25  ;;  %v960_v35 = vsel %vm476_vm6, 1.0, %v1221_v25 }
  0x52   : > { %659 = vperm.xlu0 %1050, %v649_v10   ;;  %679 = vperm.xlu2 %1052, %v653_v12   ;;  %v654_v20 = vld [vmem:[%s1631_s5 + $0x28] sm:$0xff]  ;;  %v427_v23 = vld [vmem:[%s1628_s2 + $0x10] sm:$0xff]  ;;  %v428_v24 = vld [vmem:[%s1628_s2 + $0x18] sm:$0xff]  ;;  %v955_v27 = vsel %vm471_vm2, 1.0, %v1221_v25  ;;  %v962_v39 = vsel %vm478_vm8, 1.0, %v1221_v25  ;;  %s1496_s9 = scalar_lea.vmem [#allocation9], %s1390_s29 }
  0x53   : > { %980 = vmatpush.msra.mxu3 %v1417_v8  ;;  %453 = vmatpush.msra.mxu0 %v1417_v8  ;;  %v495_v28 = vadd.f32 %v956_v26, %v955_v27  ;;  %v525_v56 = vld [vmem:[%s1397_s18] sm:$0xff]  ;;  %v526_v61 = vld [vmem:[%s1397_s18 + $0x8] sm:$0xff]  ;;  %v527_v9 = vld [vmem:[%s1397_s18 + $0x10] sm:$0xff]  ;;  %vm563_vm10 = vcmask 261120   ;;  %s759_s20 = scalar_lea.sflag [#allocation10], %s1377_s17 }
  0x54   : > { %v1054_v43 = vpop.eup %1053  ;;  %v517_v57 = vld [vmem:[%s1393_s8] sm:$0xff]  ;;  %v518_v63 = vld [vmem:[%s1393_s8 + $0x8] sm:$0xff]  ;;  %v519_v12 = vld [vmem:[%s1393_s8 + $0x10] sm:$0xff] }
  0x55   : > { %981 = vmatpush.msra.mxu3 %v1428_v11  ;;  %454 = vmatpush.msra.mxu0 %v1428_v11  ;;  %v496_v30 = vadd.f32 %v957_v29, %v495_v28  ;;  %v509_v45 = vmul.f32 64.0, %v1054_v43  ;;  %vm513_vm9 = vweird.f32 %v1054_v43 }
  0x57   : > { %982 = vmatpush.msra.mxu3 %v1436_v13  ;;  %455 = vmatpush.msra.mxu0 %v1436_v13  ;;  %v497_v32 = vadd.f32 %v958_v31, %v496_v30  ;;  %v510_v47 = vsub.f32 1.0, %v509_v45  ;;  %v555_v31 = vld [vmem:[%s1630_s4] sm:$0xff] }
  0x58   : > { %674 = vperm.xlu1 %1051, %v652_v15  }
  0x59   : > { %983 = vmatpush.msra.mxu3 %v1441_v14  ;;  %456 = vmatpush.msra.mxu0 %v1441_v14  ;;  %v498_v34 = vadd.f32 %v959_v33, %v497_v32  ;;  %v511_v49 = vmul.f32 %v1054_v43, %v510_v47  ;;  %v556_v32 = vld [vmem:[%s1630_s4 + $0x8] sm:$0xff]  ;;  %v559_v33 = vld [vmem:[%s1630_s4 + $0x20] sm:$0xff] }
  0x5a   : > { %664 = vperm.xlu0 %1050, %v650_v16   ;;  %684 = vperm.xlu2 %1052, %v654_v20  }
  0x5b   : > { %984 = vmatpush.msra.mxu3 %v1452_v17  ;;  %457 = vmatpush.msra.mxu0 %v1452_v17  ;;  %v499_v36 = vadd.f32 %v960_v35, %v498_v34  ;;  %v512_v51 = vadd.f32 %v1054_v43, %v511_v49  ;;  %v557_v34 = vld [vmem:[%s1630_s4 + $0x10] sm:$0xff]  ;;  %v560_v35 = vld [vmem:[%s1630_s4 + $0x28] sm:$0xff] }
  0x5c   : > { %952 = vmatmul.msk.f32.vlgmr.msra.gmra.mxu3 %vm429_vm0, %v426_v18  ;;  %951 = vmatmul.msk.f32.vlgmr.msra.gmra.mxu0 %vm429_vm0, %v425_v19 }
  0x5d   : > { %v500_v38 = vadd.f32 %v961_v37, %v499_v36  ;;  %v514_v53 = vsel %vm513_vm9, %v1054_v43, %v512_v51  ;;  %v558_v36 = vld [vmem:[%s1630_s4 + $0x18] sm:$0xff]  ;;  %v561_v37 = vld [vmem:[%s1630_s4 + $0x30] sm:$0xff] }
  0x5f   : > { %v501_v40 = vadd.f32 %v962_v39, %v500_v38  ;;  %v562_v38 = vld [vmem:[%s1630_s4 + $0x38] sm:$0xff] }
  0x60   : > { %694 = vperm.xlu1 %1051, %v656_v21   ;;  %v528_v21 = vld [vmem:[%s1397_s18 + $0x18] sm:$0xff]  ;;  %s786_s18 = sshll.u32 %s1496_s9, 4  ;;  %s787_s18 = int_to_ptr.vmem [resolvable:$true] %s786_s18 }
  0x61   : > { %v502_v42 = vrot.slane %v501_v40, 4 }
  0x62   : > { %689 = vperm.xlu0 %1050, %v655_v22  }
  0x63   : > { %v503_v44 = vadd.f32 %v502_v42, %v501_v40 }
  0x64   : > { %953 = vmatmul.msk.f32.gmra.mxu3 %vm429_vm0, %v427_v23  ;;  %v520_v23 = vld [vmem:[%s1393_s8 + $0x18] sm:$0xff]  ;;  %s973_s8 = sshll.u32 %s1287_s28, 3 }
  0x65   : > { %v504_v46 = vrot.slane %v503_v44, 2  ;;  %s785_s26 = scalar_lea.hbm %s1633_s7, %s973_s8 }
  0x66   : > { %s788_s30 = sshll.u32 %s785_s26, 4  ;;  %s789_s30 = int_to_ptr.hbm [resolvable:$true] %s788_s30 }
  0x67   : > { %v505_v48 = vadd.f32 %v504_v46, %v503_v44  ;;  %s1127_s14 = sshra.s32 %s789_s30, 4  ;;  %s1128_s14 = int_to_ptr.hbm [resolvable:$true] %s1127_s14 }
  0x68   : > { %s1129_s22 = scalar_lea.hbm %s1128_s14, 32  ;;  %p1134_p8 = scmp.lt.s32.totalorder %s1128_s14, %s1633_s7 }
  0x69   : > { %v506_v50 = vrot.slane %v505_v48, 1  ;;  %p1130_p5 = scmp.ne.s32.totalorder %s1128_s14, %s1129_s22 }
  0x6b   : > { %v507_v52 = vadd.f32 %v506_v50, %v505_v48  ;;  %p1131_p6 = pnand %p1130_p5, %p1314_p9 }
  0x6c   : > { %954 = vmatmul.msk.f32.gmra.mxu3 %vm429_vm0, %v428_v24 }
  0x6d   : > { %v515_v54 = vmul.f32 %v514_v53, %v507_v52  ;;  %p1132_p7 = pneg %p1131_p6 }
  0x6f   : > { %v516_v55 = vmul.f32 2.0, %v515_v54 }
  0x71   : > { %v529_v58 = vmul.f32 %v525_v56, %v516_v55  ;;  %v530_v0 = vmul.f32 %v526_v61, %v516_v55  ;;  %v531_v16 = vmul.f32 %v527_v9, %v516_v55  ;;  %v532_v25 = vmul.f32 %v528_v21, %v516_v55 }
  0xd9   : > { %v459_v59 = vpop.f32.mrf.mxu0 }
  0xda   : > { %v521_v60 = vsub.f32 %v517_v57, %v459_v59 }
  0xdc   : > { %v533_v62 = vadd.f32 %v529_v58, %v521_v60 }
  0xde   : > { %537 = vst [vmem:[%s1496_s9] sm:$0xff] %v533_v62  ;;  %v541_v3 = vmul.f32 %v533_v62, %v533_v62 }
  0xdf   : > { %v462_v1 = vpop.f32.mrf.mxu3 }
  0xe0   : > { %v522_v2 = vsub.f32 %v518_v63, %v462_v1 }
  0xe2   : > { %v534_v7 = vadd.f32 %v530_v0, %v522_v2 }
  0xe4   : > { %538 = vst [vmem:[%s1496_s9 + $0x8] sm:$0xff] %v534_v7  ;;  %v542_v10 = vmul.f32 %v534_v7, %v534_v7 }
  0xe6   : > { %v545_v15 = vadd.f32 %v542_v10, %v541_v3 }
  0xe7   : > { %v465_v18 = vpop.f32.mrf.mxu3 }
  0xe8   : > { %v523_v19 = vsub.f32 %v519_v12, %v465_v18 }
  0xea   : > { %v535_v20 = vadd.f32 %v531_v16, %v523_v19 }
  0xec   : > { %539 = vst [vmem:[%s1496_s9 + $0x10] sm:$0xff] %v535_v20  ;;  %v543_v22 = vmul.f32 %v535_v20, %v535_v20 }
  0xee   : > { %v546_v24 = vadd.f32 %v545_v15, %v543_v22 }
  0xef   : > { %v468_v26 = vpop.f32.mrf.mxu3 }
  0xf0   : > { %v524_v27 = vsub.f32 %v520_v23, %v468_v26 }
  0xf2   : > { %v536_v28 = vadd.f32 %v532_v25, %v524_v27 }
  0xf4   : > { %540 = vst [vmem:[%s1496_s9 + $0x18] sm:$0xff] %v536_v28  ;;  %v544_v29 = vmul.f32 %v536_v28, %v536_v28  ;;  %600 = vmatpush.msrb.mxu0 %v536_v28  ;;  %985 = vmatpush.msra.mxu1 %v536_v28  ;;  %s1133_s9 = scalar_lea.hbm %s1633_s7, 128 }
  0xf5   : > { %986 = vmatpush.msra.mxu2 %v536_v28  ;;  %p1135_p11 = scmp.lt.s32.totalorder %s1133_s9, %s1129_s22 }
  0xf6   : > { %v547_v30 = vadd.f32 %v546_v24, %v544_v29  ;;  %601 = vmatpush.msrb.mxu0 %v535_v20  ;;  %987 = vmatpush.msra.mxu1 %v535_v20 }
  0xf7   : > { %988 = vmatpush.msra.mxu2 %v535_v20  ;;  %p1136_p12 = por %p1135_p11, %p1134_p8 }
  0xf8   : > { %602 = vmatpush.msrb.mxu0 %v534_v7  ;;  %989 = vmatpush.msra.mxu1 %v534_v7 }
  0xf9   : > { %990 = vmatpush.msra.mxu2 %v534_v7  ;;  %p1137_p13 = pnand %p1136_p12, %p1132_p7 }
  0xfa   : > { %603 = vmatpush.msrb.mxu0 %v533_v62  ;;  %991 = vmatpush.msra.mxu1 %v533_v62 }
  0xfb   : > { %992 = vmatpush.msra.mxu2 %v533_v62  ;;  %963 = vmatmul.msk.f32.vlgmr.msrb.gmra.mxu0 %vm563_vm10, %v555_v31 }
  0xfc   : > { %964 = vmatmul.msk.f32.vlgmr.msra.gmra.mxu1 %vm563_vm10, %v556_v32  ;;  %967 = vmatmul.msk.f32.vlgmr.msra.gmra.mxu2 %vm563_vm10, %v559_v33 }
 0x104   : > { %965 = vmatmul.msk.f32.gmra.mxu1 %vm563_vm10, %v557_v34  ;;  %968 = vmatmul.msk.f32.gmra.mxu2 %vm563_vm10, %v560_v35 }
 0x10c   : > { %966 = vmatmul.msk.f32.gmra.mxu1 %vm563_vm10, %v558_v36  ;;  %969 = vmatmul.msk.f32.gmra.mxu2 %vm563_vm10, %v561_v37 }
 0x114   : > { %970 = vmatmul.msk.f32.gmra.mxu2 %vm563_vm10, %v562_v38 }
 0x115   : > { %1140 = shalt.err (!%p1137_p13)
}
 0x116   : > { %s1223_s11 = smov 128   ;;  %s1224_s29 = smov 512   ;;  %v548_v39 = vrot.slane %v547_v30, 4  ;;  %v660_v53 = vpop.permute.xlu0 %659  ;;  %v680_v60 = vpop.permute.xlu2 %679 }
 0x117   : > { %s1225_s12 = smov 8   ;;  %v670_v63 = vpop.permute.xlu1 %669  ;;  %s769_s26 = scalar_lea.hbm %s1632_s6, %s973_s8 }
 0x118   : > { %998 = dma.vmem_to_hbm [thread:$0]  (%p1314_p9), %s787_s18, 512, %s789_s30, %s759_s20, %s1223_s11, %s1224_s29, %s1225_s12   ;;  %v549_v40 = vadd.f32 %v548_v39, %v547_v30 }
 0x119   : > { %s1571_s18 = scalar_lea.vmem [#allocation8], %s946_s19  ;;  %s772_s20 = sshll.u32 %s769_s26, 4  ;;  %s773_s20 = int_to_ptr.hbm [resolvable:$true] %s772_s20 }
 0x11a   : > { %v550_v41 = vrot.slane %v549_v40, 2  ;;  %s770_s30 = sshll.u32 %s1571_s18, 4  ;;  %s754_s14 = scalar_lea.sflag [#allocation4], %s1377_s17  ;;  %s771_s30 = int_to_ptr.vmem [resolvable:$true] %s770_s30 }
 0x11b   : > { %s1155_s22 = sshra.s32 %s773_s20, 4  ;;  %s1161_s8 = scalar_lea.hbm %s1632_s6, 256  ;;  %s1156_s22 = int_to_ptr.hbm [resolvable:$true] %s1155_s22 }
 0x11c   : > { %v551_v42 = vadd.f32 %v550_v41, %v549_v40  ;;  %s1157_s23 = scalar_lea.hbm %s1156_s22, 64  ;;  %p1162_p3 = scmp.lt.s32.totalorder %s1156_s22, %s1632_s6 }
 0x11d   : > { %p1158_p0 = scmp.ne.s32.totalorder %s1156_s22, %s1157_s23  ;;  %p1163_p4 = scmp.lt.s32.totalorder %s1161_s8, %s1157_s23 }
 0x11e   : > { %v552_v43 = vrot.slane %v551_v42, 1  ;;  %v665_v58 = vpop.permute.xlu0 %664  ;;  %v685_v19 = vpop.permute.xlu2 %684 }
 0x11f   : > { %v675_v28 = vpop.permute.xlu1 %674  ;;  %p1159_p1 = pnand %p1158_p0, %p1314_p9  ;;  %p1164_p5 = por %p1163_p4, %p1162_p3 }
 0x120   : > { %v553_v44 = vadd.f32 %v552_v43, %v551_v42 }
 0x121   : > { %p1160_p2 = pneg %p1159_p1 }
 0x122   : > { %v554_v45 = vmul.f32 0.03125, %v553_v44 }
 0x123   : > { %p1165_p6 = pnand %p1164_p5, %p1160_p2 }
 0x124   : > { %1055 = vrsqrt.f32 %v554_v45  ;;  %vm644_vm11 = vcmp.eq.f32.partialorder %v554_v45, inf  ;;  %v647_v55 = vand.u32 2147483648, %v554_v45  ;;  %vm646_vm12 = vcmp.eq.f32.partialorder %v554_v45, 0.0 }
 0x126   : > { %v690_v35 = vpop.permute.xlu0 %689 }
 0x12a   : > { %v1056_v46 = vpop.eup %1055 }
 0x12b   : > { %v638_v47 = vmul.f32 %v1056_v46, %v554_v45 }
 0x12d   : > { %v639_v48 = vmul.f32 %v1056_v46, %v638_v47 }
 0x12f   : > { %v640_v49 = vmul.f32 0.5, %v639_v48 }
 0x131   : > { %v641_v50 = vsub.f32 1.5, %v640_v49 }
 0x133   : > { %v642_v51 = vmul.f32 %v1056_v46, %v641_v50  ;;  %v695_v50 = vpop.permute.xlu1 %694 }
 0x135   : > { %v643_v52 = vmul.f32 %v642_v51, %v554_v45 }
 0x137   : > { %v645_v54 = vsel %vm644_vm11, %v554_v45, %v643_v52 }
 0x138   : > { %v1559_v56 = vsel %vm646_vm12, %v647_v55, %v645_v54 }
 0x139   : > { %v697_v57 = vmul.f32 %v660_v53, %v1559_v56  ;;  %v698_v59 = vmul.f32 %v665_v58, %v1559_v56  ;;  %v701_v0 = vmul.f32 %v680_v60, %v1559_v56  ;;  %v699_v9 = vmul.f32 %v670_v63, %v1559_v56 }
 0x13a   : > { %v702_v26 = vmul.f32 %v685_v19, %v1559_v56  ;;  %v700_v30 = vmul.f32 %v675_v28, %v1559_v56  ;;  %v703_v41 = vmul.f32 %v690_v35, %v1559_v56  ;;  %v704_v54 = vmul.f32 %v695_v50, %v1559_v56 }
 0x13b   : > { %v705_v61 = vmax.f32 %v697_v57, 0.0  ;;  %v706_v62 = vmax.f32 %v698_v59, 0.0  ;;  %v709_v16 = vmax.f32 %v701_v0, 0.0  ;;  %v707_v21 = vmax.f32 %v699_v9, 0.0 }
 0x13c   : > { %v710_v33 = vmax.f32 %v702_v26, 0.0  ;;  %v708_v36 = vmax.f32 %v700_v30, 0.0  ;;  %v711_v47 = vmax.f32 %v703_v41, 0.0 }
 0x13d   : > { %v713_v2 = vsub.f32 0.0, %v705_v61  ;;  %v714_v10 = vsub.f32 0.0, %v706_v62  ;;  %v717_v25 = vsub.f32 0.0, %v709_v16  ;;  %v715_v29 = vsub.f32 0.0, %v707_v21 }
 0x13e   : > { %v718_v40 = vsub.f32 0.0, %v710_v33  ;;  %v716_v45 = vsub.f32 0.0, %v708_v36 }
 0x178   : > { %v605_v1 = vpop.f32.mrf.mxu0 }
 0x179   : > { %v629_v3 = vadd.f32 %v605_v1, %v1452_v17  ;;  %v608_v7 = vpop.f32.mrf.mxu1 }
 0x17a   : > { %v630_v12 = vadd.f32 %v608_v7, %v1441_v14 }
 0x17b   : > { %v721_v15 = vmax.f32 %v713_v2, %v629_v3 }
 0x17c   : > { %v722_v18 = vmax.f32 %v714_v10, %v630_v12 }
 0x17d   : > { %v729_v20 = vmin.f32 %v705_v61, %v721_v15 }
 0x17e   : > { %v730_v22 = vmin.f32 %v706_v62, %v722_v18 }
 0x17f   : > { %v737_v23 = vsub.f32 %v629_v3, %v729_v20  ;;  %v617_v24 = vpop.f32.mrf.mxu2 }
 0x180   : > { %v738_v17 = vsub.f32 %v630_v12, %v730_v22  ;;  %v633_v27 = vadd.f32 %v617_v24, %v1417_v8 }
 0x181   : > { %745 = vst [vmem:[%s1571_s18] sm:$0xff] %v737_v23  ;;  %v611_v14 = vpop.f32.mrf.mxu1 }
 0x182   : > { %746 = vst [vmem:[%s1571_s18 + $0x8] sm:$0xff] %v738_v17  ;;  %v725_v31 = vmax.f32 %v717_v25, %v633_v27  ;;  %v631_v32 = vadd.f32 %v611_v14, %v1436_v13 }
 0x184   : > { %v733_v34 = vmin.f32 %v709_v16, %v725_v31  ;;  %v723_v8 = vmax.f32 %v715_v29, %v631_v32 }
 0x186   : > { %v741_v37 = vsub.f32 %v633_v27, %v733_v34  ;;  %v731_v38 = vmin.f32 %v707_v21, %v723_v8 }
 0x187   : > { %v620_v39 = vpop.f32.mrf.mxu2 }
 0x188   : > { %749 = vst [vmem:[%s1571_s18 + $0x20] sm:$0xff] %v741_v37  ;;  %v739_v42 = vsub.f32 %v631_v32, %v731_v38  ;;  %v634_v43 = vadd.f32 %v620_v39, %v1412_v6  ;;  %v719_v6 = vsub.f32 0.0, %v711_v47 }
 0x189   : > { %v614_v44 = vpop.f32.mrf.mxu1 }
 0x18a   : > { %747 = vst [vmem:[%s1571_s18 + $0x10] sm:$0xff] %v739_v42  ;;  %v726_v13 = vmax.f32 %v718_v40, %v634_v43  ;;  %v632_v46 = vadd.f32 %v614_v44, %v1428_v11  ;;  %v712_v11 = vmax.f32 %v704_v54, 0.0 }
 0x18c   : > { %v734_v48 = vmin.f32 %v710_v33, %v726_v13  ;;  %v724_v49 = vmax.f32 %v716_v45, %v632_v46  ;;  %v720_v62 = vsub.f32 0.0, %v712_v11 }
 0x18e   : > { %v742_v51 = vsub.f32 %v634_v43, %v734_v48  ;;  %v732_v52 = vmin.f32 %v708_v36, %v724_v49 }
 0x18f   : > { %v623_v53 = vpop.f32.mrf.mxu2 }
 0x190   : > { %750 = vst [vmem:[%s1571_s18 + $0x28] sm:$0xff] %v742_v51  ;;  %v740_v55 = vsub.f32 %v632_v46, %v732_v52  ;;  %v635_v57 = vadd.f32 %v623_v53, %v1407_v5 }
 0x192   : > { %748 = vst [vmem:[%s1571_s18 + $0x18] sm:$0xff] %v740_v55  ;;  %v727_v58 = vmax.f32 %v719_v6, %v635_v57 }
 0x194   : > { %v735_v59 = vmin.f32 %v711_v47, %v727_v58 }
 0x196   : > { %v743_v60 = vsub.f32 %v635_v57, %v735_v59 }
 0x197   : > { %v626_v61 = vpop.f32.mrf.mxu2 }
 0x198   : > { %751 = vst [vmem:[%s1571_s18 + $0x30] sm:$0xff] %v743_v60  ;;  %v636_v63 = vadd.f32 %v626_v61, %v1404_v4 }
 0x19a   : > { %v728_v5 = vmax.f32 %v720_v62, %v636_v63 }
 0x19c   : > { %v736_v56 = vmin.f32 %v712_v11, %v728_v5 }
 0x19e   : > { %v744_v0 = vsub.f32 %v636_v63, %v736_v56 }
 0x1a0   : > { %752 = vst [vmem:[%s1571_s18 + $0x38] sm:$0xff] %v744_v0 }
 0x1a1   : > { %1168 = shalt.err (!%p1165_p6)
}
 0x1a2   : > { %997 = dma.vmem_to_hbm [thread:$0]  (%p1314_p9), %s771_s30, 1024, %s773_s20, %s754_s14, %s1223_s11, %s1224_s29, %s1225_s12  }
 0x1a3 PF: > { %p1008_p7 = scmp.ge.s32.totalorder %s1215_s27, 2  ;;  %s803_s21 = sand.u32 1, %s1203_s24  }
 0x1a4   : > { %s804_s18 = scalar_lea.sflag [#allocation4], %s803_s21 }
 0x1a5   : > { %p1002_p8 = pnand %p1008_p7, %p1318_p10 }
 0x1a7   : > { %p1003_p11 = pneg %p1002_p8 }
 0x1a9   : > { %1194 = dma.done.wait (%p1003_p11), %s804_s18, 1024  }
 0x1aa   : > { %1196 = vsyncadd (%p1003_p11), %s804_s18, 4294966272  ;;  %s814_s19 = scalar_lea.sflag [#allocation10], %s803_s21 }
 0x1ab   : > { %1198 = dma.done.wait (%p1003_p11), %s814_s19, 512  }
 0x1ac   : > { %1200 = vsyncadd (%p1003_p11), %s814_s19, 4294966784  ;;  %s1653_s27 = sld [smem:[#allocation16_spill]]  ;;  %s1656_s24 = smov %s1207_s25 }
 0x1ad   : > { %s1654_s13 = sld [smem:[#allocation15_spill]] }
 0x1ae   : > { %s1655_s26 = sld [smem:[#allocation17_spill]] }
 0x1b2   : > { %p27_p9 = scmp.ge.s32.totalorder %s1653_s27, 6  }
 0x1b3   : > { %s1657_s25 = smov %s1654_s13 }
 0x1b4   :  { %29 = sbr.rel (!%p27_p9) target bundleno = 9 (0x9), region = 165 }
 0x1b9   :  { %820 = vsyncpa [#allocation3], 1 }
 0x1ba   :  { %822 = vsyncpa [#allocation3 + $0x1], 1 }
 0x1bb   :  { %823 = vsyncpa [#allocation7], 1 }
 0x1bc   :  { %825 = vsyncpa [#allocation7 + $0x1], 1 }
 0x1bd   :  { %826 = vsyncpa [#allocation4], 1 }
 0x1be   :  { %828 = vsyncpa [#allocation4 + $0x1], 1 }
 0x1bf   :  { %829 = vsyncpa [#allocation10], 1 }
 0x1c0   :  { %831 = vsyncpa [#allocation10 + $0x1], 1 }

// kernel: tpu_custom_call.1
= control target key start
LH: loop header
LB: loop body
LE: loop exit
PB: predicated region body
PF: predicated region fallthrough
CT: control target
= control target key end

     0   :  { %13 = vsyncpa [#allocation3], 0  ;;  %s1626_s0 = inlined_call_operand.hbm [shape: f32[64,512], index: 0, kind: input, shape index: {}]   ;;  %s1627_s1 = inlined_call_operand.vmem [shape: f32[32,512], index: 1, kind: input, shape index: {}]   ;;  %s1628_s2 = inlined_call_operand.vmem [shape: f32[32,64], index: 2, kind: input, shape index: {}]   ;;  %s1629_s3 = inlined_call_operand.hbm [shape: f32[32,512], index: 3, kind: input, shape index: {}]   ;;  %s1630_s4 = inlined_call_operand.vmem [shape: f32[64,32], index: 4, kind: input, shape index: {}]   ;;  %s1631_s5 = inlined_call_operand.vmem [shape: f32[64,1], index: 5, kind: input, shape index: {}]   ;;  %s1632_s6 = inlined_call_operand.hbm [shape: f32[64,512], index: 6, kind: output, shape index: {0}]   ;;  %s1633_s7 = inlined_call_operand.hbm [shape: f32[32,512], index: 7, kind: output, shape index: {1}]  }
   0x1   :  { %15 = vsyncpa [#allocation3 + $0x1], 0 }
   0x2   :  { %16 = vsyncpa [#allocation7], 0 }
   0x3   :  { %18 = vsyncpa [#allocation7 + $0x1], 0 }
   0x4   :  { %19 = vsyncpa [#allocation4], 0 }
   0x5   :  { %21 = vsyncpa [#allocation4 + $0x1], 0 }
   0x6   :  { %22 = vsyncpa [#allocation10], 0 }
   0x7   :  { %24 = vsyncpa [#allocation10 + $0x1], 0  ;;  %s1266_s24 = smov 0   ;;  %s1268_s25 = smov 0  }
   0x8   :  { %s1270_s26 = smov 0   ;;  %s1272_s27 = smov 0  }
   0x9 LB: > { %1641 = sst [smem:[#allocation15_spill]] %s1211_s26  ;;  %s1287_s28 = sadd.s32 4294967295, %s1215_s27   ;;  %s1215_s27 = sphi %s1272_s27, %s1653_s27   ;;  %s1211_s26 = sphi %s1270_s26, %s1655_s26   ;;  %s1207_s25 = sphi %s1268_s25, %s1657_s25   ;;  %s1203_s24 = sphi %s1266_s24, %s1656_s24  }
   0xa   : > { %s936_s29 = sadd.s32 4294967294, %s1215_s27   ;;  %s1291_s30 = sadd.s32 1, %s1215_s27  }
   0xb   : > { %1642 = sst [smem:[#allocation16_spill]] %s1291_s30  ;;  %s37_s8 = sadd.s32 1, %s1211_s26 }
   0xc   : > { %s34_s9 = ssub.s32 %s1215_s27, %s1291_s30  ;;  %p44_p0 = scmp.ne.s32.totalorder %s1211_s26, %s1207_s25 }
   0xd   : > { %p35_p1 = scmp.eq.s32.totalorder %s34_s9, 0  ;;  %p45_p2 = scmp.eq.s32.totalorder %s1215_s27, 0 }
   0xe   : > { %p50_p3 = scmp.ne.s32.totalorder %s1207_s25, %s1203_s24  ;;  %p51_p4 = scmp.eq.s32.totalorder %s1287_s28, 0 }
   0xf   : > { %s1303_s10 = scalar_select %p35_p1, %s1211_s26, %s37_s8  }
  0x10   : > { %p1305_p5 = por %p45_p2, %p44_p0  ;;  %p1309_p6 = por %p51_p4, %p50_p3 }
  0x11   : > { %1643 = sst [smem:[#allocation17_spill]] %s1303_s10  ;;  %p189_p7 = scmp.eq.s32.totalorder %s1287_s28, 3 }
  0x12   : > { %p195_p8 = scmp.eq.s32.totalorder %s936_s29, 3  ;;  %p938_p11 = scmp.ge.s32.totalorder %s1215_s27, 4 }
  0x13   : > { %p1314_p9 = por %p189_p7, %p44_p0  ;;  %s1324_s15 = sand.u32 (!%p938_p11), 1, %s1211_s26  }
  0x14   : > { %p1318_p10 = por %p195_p8, %p50_p3  ;;  %246 = sbr.rel (%p938_p11) target bundleno = 63 (0x3f), region = 28 }
  0x15   : > { %s1327_s16 = sshll.u32 (!%p938_p11), %s1215_s27, 3  ;;  %s939_s17 = sshll.u32 (!%p938_p11), %s1324_s15, 6 }
  0x16   : > { %s1647_s14 = scalar_select %p1318_p10, 1, 0 }
  0x17   : > { %s258_s20 = scalar_lea.hbm (!%p938_p11), %s1626_s0, %s1327_s16  ;;  %s254_s22 = scalar_lea.vmem (!%p938_p11), [#allocation2], %s939_s17 }
  0x18   : > { %1648 = sst [smem:[#allocation18_spill]] %s1647_s14  ;;  %s259_s21 = sshll.u32 (!%p938_p11), %s258_s20, 4  ;;  %s260_s21 = int_to_ptr.hbm [resolvable:$true] %s259_s21 }
  0x19   : > { %s261_s23 = sshll.u32 %s254_s22, 4  ;;  %s251_s29 = scalar_lea.sflag [#allocation3], %s1324_s15  ;;  %s262_s23 = int_to_ptr.vmem [resolvable:$true] %s261_s23 }
  0x1a   : > { %s1057_s8 = sshra.s32 %s260_s21, 4  ;;  %s1063_s30 = scalar_lea.hbm %s1626_s0, 256  ;;  %s1058_s8 = int_to_ptr.hbm [resolvable:$true] %s1057_s8 }
  0x1b   : > { %s1059_s9 = scalar_lea.hbm %s1058_s8, 64  ;;  %p1064_p1 = scmp.lt.s32.totalorder %s1058_s8, %s1626_s0 }
  0x1c   : > { %p1060_p12 = scmp.ne.s32.totalorder %s1058_s8, %s1059_s9  ;;  %p1065_p2 = scmp.lt.s32.totalorder %s1063_s30, %s1059_s9 }
  0x1e   : > { %p1061_p13 = pnand %p1060_p12, %p1305_p5  ;;  %p1066_p3 = por %p1065_p2, %p1064_p1 }
  0x20   : > { %p1062_p0 = pneg %p1061_p13 }
  0x22   : > { %p1067_p4 = pnand %p1066_p3, %p1062_p0 }
  0x24   : > { %1070 = shalt.err (!%p1067_p4)
}
  0x25   : > { %s1638_s17 = smov 512   ;;  %s1639_s19 = smov 128  }
  0x26   : > { %s1640_s20 = smov 8   ;;  %270 = sbr.rel (!%p1305_p5) target bundleno = 46 (0x2e), region = 36 }
  0x27   : > { %993 = dma.hbm_to_vmem [thread:$0]  (%p1305_p5), %s260_s21, 1024, %s262_s23, %s251_s29, %s1638_s17, %s1639_s19, %s1640_s20  }
  0x28   : > { %s941_s26 = sshll.u32 (%p1305_p5), %s1324_s15, 5  ;;  %s276_s14 = scalar_lea.vmem (%p1305_p5), %s1627_s1, %s1327_s16 }
  0x29   : > { %v311_v0 = vld [vmem:[%s276_s14] sm:$0xff] (%p1305_p5)  ;;  %s274_s22 = scalar_lea.vmem (%p1305_p5), [#allocation5], %s941_s26 }
  0x2a   : > { %v313_v1 = vld [vmem:[%s276_s14 + $0x20] sm:$0xff] (%p1305_p5)  ;;  %312 = vst [vmem:[%s274_s22] sm:$0xff] (%p1305_p5), %v311_v0 }
  0x2b   : > { %v315_v2 = vld [vmem:[%s276_s14 + $0x40] sm:$0xff]  ;;  %314 = vst [vmem:[%s274_s22 + $0x8] sm:$0xff] %v313_v1 }
  0x2c   : > { %v317_v3 = vld [vmem:[%s276_s14 + $0x60] sm:$0xff]  ;;  %316 = vst [vmem:[%s274_s22 + $0x10] sm:$0xff] %v315_v2 }
  0x2d   : > { %318 = vst [vmem:[%s274_s22 + $0x18] sm:$0xff] %v317_v3 }
  0x2e PF: > { %s943_s21 = sshll.u32 %s1324_s15, 5  ;;  %s333_s8 = scalar_lea.hbm %s1629_s3, %s1327_s16 }
  0x2f   : > { %s334_s9 = sshll.u32 %s333_s8, 4  ;;  %s329_s18 = scalar_lea.vmem [#allocation6], %s943_s21  ;;  %s335_s9 = int_to_ptr.hbm [resolvable:$true] %s334_s9 }
  0x30   : > { %s336_s10 = sshll.u32 %s329_s18, 4  ;;  %s326_s26 = scalar_lea.sflag [#allocation7], %s1324_s15  ;;  %s337_s10 = int_to_ptr.vmem [resolvable:$true] %s336_s10 }
  0x31   : > { %s1085_s30 = sshra.s32 %s335_s9, 4  ;;  %s1091_s19 = scalar_lea.hbm %s1629_s3, 128  ;;  %s1086_s30 = int_to_ptr.hbm [resolvable:$true] %s1085_s30 }
  0x32   : > { %s1087_s14 = scalar_lea.hbm %s1086_s30, 32  ;;  %p1092_p12 = scmp.lt.s32.totalorder %s1086_s30, %s1629_s3 }
  0x33   : > { %p1088_p7 = scmp.ne.s32.totalorder %s1086_s30, %s1087_s14  ;;  %p1093_p13 = scmp.lt.s32.totalorder %s1091_s19, %s1087_s14 }
  0x35   : > { %p1089_p8 = pnand %p1088_p7, %p1305_p5  ;;  %p1094_p0 = por %p1093_p13, %p1092_p12 }
  0x37   : > { %p1090_p11 = pneg %p1089_p8 }
  0x39   : > { %p1095_p1 = pnand %p1094_p0, %p1090_p11 }
  0x3b   : > { %1098 = shalt.err (!%p1095_p1)
}
  0x3c   : > { %s1649_s15 = smov 8   ;;  %s1650_s16 = smov 128  }
  0x3d   : > { %s1651_s21 = smov 512  }
  0x3e   : > { %994 = dma.hbm_to_vmem [thread:$0]  (%p1305_p5), %s335_s9, 512, %s337_s10, %s326_s26, %s1651_s21, %s1650_s16, %s1649_s15  }
  0x3f PF: > { %p945_p2 = scmp.ge.s32.totalorder %s1215_s27, 1  ;;  %p344_p3 = scmp.lt.s32.totalorder %s1215_s27, 5 }
  0x41   : > { %p345_p4 = pnand %p945_p2, %p344_p3 }
  0x42   : > { %s1377_s17 = sand.u32 (!%p345_p4), 1, %s1207_s25  }
  0x43   : > { %348 = sbr.rel (%p345_p4) target bundleno = 419 (0x1a3), region = 78  ;;  %s946_s19 = sshll.u32 (!%p345_p4), %s1377_s17, 6 }
  0x44   : > { %s351_s11 = scalar_lea.sflag (!%p345_p4), [#allocation3], %s1377_s17  ;;  %s1383_s20 = scalar_lea.vmem (!%p345_p4), [#allocation2], %s946_s19 }
  0x48   : > { %1186 = dma.done.wait (%p1309_p6), %s351_s11, 1024  }
  0x49   : > { %1188 = vsyncadd (%p1309_p6), %s351_s11, 4294966272  ;;  %s1390_s29 = sshll.u32 %s1377_s17, 5  ;;  %s368_s9 = scalar_lea.sflag [#allocation7], %s1377_s17 }
  0x4a   : > { %s1393_s8 = scalar_lea.vmem [#allocation5], %s1390_s29  ;;  %s1397_s18 = scalar_lea.vmem [#allocation6], %s1390_s29 }
  0x4b   : > { %1190 = dma.done.wait (%p1309_p6), %s368_s9, 512  }
  0x4c   : > { %1192 = vsyncadd (%p1309_p6), %s368_s9, 4294966784  ;;  %v1404_v4 = vld [vmem:[%s1383_s20 + $0x38] sm:$0xff]  ;;  %v1407_v5 = vld [vmem:[%s1383_s20 + $0x30] sm:$0xff]  ;;  %v1220_v7 = vmov 0   ;;  %vm429_vm0 = vcmask 523264   ;;  %v1221_v25 = vmov 0.0  }
  0x4d   : > { %977 = vmatpush.msra.mxu3 %v1404_v4  ;;  %450 = vmatpush.msra.mxu0 %v1404_v4  ;;  %v1412_v6 = vld [vmem:[%s1383_s20 + $0x28] sm:$0xff]  ;;  %v1417_v8 = vld [vmem:[%s1383_s20 + $0x20] sm:$0xff]  ;;  %v651_v9 = vld [vmem:[%s1631_s5 + $0x10] sm:$0xff]  ;;  %vm477_vm7 = vcmp.ne.f32.partialorder %v1407_v5, 0.0  ;;  %vm478_vm8 = vcmp.ne.f32.partialorder %v1404_v4, 0.0  ;;  %v1222_v41 = vmov 64.0  }
  0x4e   : > { %1051 = vset.pattern.permute.xlu1 %v1220_v7  ;;  %1050 = vset.pattern.permute.xlu0 %v1220_v7  ;;  %v649_v10 = vld [vmem:[%s1631_s5] sm:$0xff]  ;;  %v1428_v11 = vld [vmem:[%s1383_s20 + $0x18] sm:$0xff]  ;;  %v1436_v13 = vld [vmem:[%s1383_s20 + $0x10] sm:$0xff]  ;;  %vm475_vm5 = vcmp.ne.f32.partialorder %v1417_v8, 0.0  ;;  %vm476_vm6 = vcmp.ne.f32.partialorder %v1412_v6, 0.0  ;;  %v961_v37 = vsel %vm477_vm7, 1.0, %v1221_v25  ;;  %1053 = vrcp.f32 %v1222_v41 }
  0x4f   : > { %978 = vmatpush.msra.mxu3 %v1407_v5  ;;  %451 = vmatpush.msra.mxu0 %v1407_v5  ;;  %v653_v12 = vld [vmem:[%s1631_s5 + $0x20] sm:$0xff]  ;;  %v1441_v14 = vld [vmem:[%s1383_s20 + $0x8] sm:$0xff]  ;;  %v652_v15 = vld [vmem:[%s1631_s5 + $0x18] sm:$0xff]  ;;  %vm473_vm3 = vcmp.ne.f32.partialorder %v1436_v13, 0.0  ;;  %vm474_vm4 = vcmp.ne.f32.partialorder %v1428_v11, 0.0  ;;  %v959_v33 = vsel %vm475_vm5, 1.0, %v1221_v25 }
  0x50   : > { %1052 = vset.pattern.permute.xlu2 %v1220_v7  ;;  %669 = vperm.xlu1 %1051, %v651_v9   ;;  %v650_v16 = vld [vmem:[%s1631_s5 + $0x8] sm:$0xff]  ;;  %v1452_v17 = vld [vmem:[%s1383_s20] sm:$0xff]  ;;  %v656_v21 = vld [vmem:[%s1631_s5 + $0x38] sm:$0xff]  ;;  %vm472_vm1 = vcmp.ne.f32.partialorder %v1441_v14, 0.0  ;;  %v957_v29 = vsel %vm473_vm3, 1.0, %v1221_v25  ;;  %v958_v31 = vsel %vm474_vm4, 1.0, %v1221_v25 }
  0x51   : > { %979 = vmatpush.msra.mxu3 %v1412_v6  ;;  %452 = vmatpush.msra.mxu0 %v1412_v6  ;;  %v426_v18 = vld [vmem:[%s1628_s2 + $0x8] sm:$0xff]  ;;  %v425_v19 = vld [vmem:[%s1628_s2] sm:$0xff]  ;;  %v655_v22 = vld [vmem:[%s1631_s5 + $0x30] sm:$0xff]  ;;  %vm471_vm2 = vcmp.ne.f32.partialorder %v1452_v17, 0.0  ;;  %v956_v26 = vsel %vm472_vm1, 1.0, %v1221_v25  ;;  %v960_v35 = vsel %vm476_vm6, 1.0, %v1221_v25 }
  0x52   : > { %659 = vperm.xlu0 %1050, %v649_v10   ;;  %679 = vperm.xlu2 %1052, %v653_v12   ;;  %v654_v20 = vld [vmem:[%s1631_s5 + $0x28] sm:$0xff]  ;;  %v427_v23 = vld [vmem:[%s1628_s2 + $0x10] sm:$0xff]  ;;  %v428_v24 = vld [vmem:[%s1628_s2 + $0x18] sm:$0xff]  ;;  %v955_v27 = vsel %vm471_vm2, 1.0, %v1221_v25  ;;  %v962_v39 = vsel %vm478_vm8, 1.0, %v1221_v25  ;;  %s1496_s9 = scalar_lea.vmem [#allocation9], %s1390_s29 }
  0x53   : > { %980 = vmatpush.msra.mxu3 %v1417_v8  ;;  %453 = vmatpush.msra.mxu0 %v1417_v8  ;;  %v495_v28 = vadd.f32 %v956_v26, %v955_v27  ;;  %v525_v56 = vld [vmem:[%s1397_s18] sm:$0xff]  ;;  %v526_v61 = vld [vmem:[%s1397_s18 + $0x8] sm:$0xff]  ;;  %v527_v9 = vld [vmem:[%s1397_s18 + $0x10] sm:$0xff]  ;;  %vm563_vm10 = vcmask 261120   ;;  %s759_s20 = scalar_lea.sflag [#allocation10], %s1377_s17 }
  0x54   : > { %v1054_v43 = vpop.eup %1053  ;;  %v517_v57 = vld [vmem:[%s1393_s8] sm:$0xff]  ;;  %v518_v63 = vld [vmem:[%s1393_s8 + $0x8] sm:$0xff]  ;;  %v519_v12 = vld [vmem:[%s1393_s8 + $0x10] sm:$0xff] }
  0x55   : > { %981 = vmatpush.msra.mxu3 %v1428_v11  ;;  %454 = vmatpush.msra.mxu0 %v1428_v11  ;;  %v496_v30 = vadd.f32 %v957_v29, %v495_v28  ;;  %v509_v45 = vmul.f32 64.0, %v1054_v43  ;;  %vm513_vm9 = vweird.f32 %v1054_v43 }
  0x57   : > { %982 = vmatpush.msra.mxu3 %v1436_v13  ;;  %455 = vmatpush.msra.mxu0 %v1436_v13  ;;  %v497_v32 = vadd.f32 %v958_v31, %v496_v30  ;;  %v510_v47 = vsub.f32 1.0, %v509_v45  ;;  %v555_v31 = vld [vmem:[%s1630_s4] sm:$0xff] }
  0x58   : > { %674 = vperm.xlu1 %1051, %v652_v15  }
  0x59   : > { %983 = vmatpush.msra.mxu3 %v1441_v14  ;;  %456 = vmatpush.msra.mxu0 %v1441_v14  ;;  %v498_v34 = vadd.f32 %v959_v33, %v497_v32  ;;  %v511_v49 = vmul.f32 %v1054_v43, %v510_v47  ;;  %v556_v32 = vld [vmem:[%s1630_s4 + $0x8] sm:$0xff]  ;;  %v559_v33 = vld [vmem:[%s1630_s4 + $0x20] sm:$0xff] }
  0x5a   : > { %664 = vperm.xlu0 %1050, %v650_v16   ;;  %684 = vperm.xlu2 %1052, %v654_v20  }
  0x5b   : > { %984 = vmatpush.msra.mxu3 %v1452_v17  ;;  %457 = vmatpush.msra.mxu0 %v1452_v17  ;;  %v499_v36 = vadd.f32 %v960_v35, %v498_v34  ;;  %v512_v51 = vadd.f32 %v1054_v43, %v511_v49  ;;  %v557_v34 = vld [vmem:[%s1630_s4 + $0x10] sm:$0xff]  ;;  %v560_v35 = vld [vmem:[%s1630_s4 + $0x28] sm:$0xff] }
  0x5c   : > { %952 = vmatmul.msk.f32.vlgmr.msra.gmra.mxu3 %vm429_vm0, %v426_v18  ;;  %951 = vmatmul.msk.f32.vlgmr.msra.gmra.mxu0 %vm429_vm0, %v425_v19 }
  0x5d   : > { %v500_v38 = vadd.f32 %v961_v37, %v499_v36  ;;  %v514_v53 = vsel %vm513_vm9, %v1054_v43, %v512_v51  ;;  %v558_v36 = vld [vmem:[%s1630_s4 + $0x18] sm:$0xff]  ;;  %v561_v37 = vld [vmem:[%s1630_s4 + $0x30] sm:$0xff] }
  0x5f   : > { %v501_v40 = vadd.f32 %v962_v39, %v500_v38  ;;  %v562_v38 = vld [vmem:[%s1630_s4 + $0x38] sm:$0xff] }
  0x60   : > { %694 = vperm.xlu1 %1051, %v656_v21   ;;  %v528_v21 = vld [vmem:[%s1397_s18 + $0x18] sm:$0xff]  ;;  %s786_s18 = sshll.u32 %s1496_s9, 4  ;;  %s787_s18 = int_to_ptr.vmem [resolvable:$true] %s786_s18 }
  0x61   : > { %v502_v42 = vrot.slane %v501_v40, 4 }
  0x62   : > { %689 = vperm.xlu0 %1050, %v655_v22  }
  0x63   : > { %v503_v44 = vadd.f32 %v502_v42, %v501_v40 }
  0x64   : > { %953 = vmatmul.msk.f32.gmra.mxu3 %vm429_vm0, %v427_v23  ;;  %v520_v23 = vld [vmem:[%s1393_s8 + $0x18] sm:$0xff]  ;;  %s973_s8 = sshll.u32 %s1287_s28, 3 }
  0x65   : > { %v504_v46 = vrot.slane %v503_v44, 2  ;;  %s785_s26 = scalar_lea.hbm %s1633_s7, %s973_s8 }
  0x66   : > { %s788_s30 = sshll.u32 %s785_s26, 4  ;;  %s789_s30 = int_to_ptr.hbm [resolvable:$true] %s788_s30 }
  0x67   : > { %v505_v48 = vadd.f32 %v504_v46, %v503_v44  ;;  %s1127_s14 = sshra.s32 %s789_s30, 4  ;;  %s1128_s14 = int_to_ptr.hbm [resolvable:$true] %s1127_s14 }
  0x68   : > { %s1129_s22 = scalar_lea.hbm %s1128_s14, 32  ;;  %p1134_p8 = scmp.lt.s32.totalorder %s1128_s14, %s1633_s7 }
  0x69   : > { %v506_v50 = vrot.slane %v505_v48, 1  ;;  %p1130_p5 = scmp.ne.s32.totalorder %s1128_s14, %s1129_s22 }
  0x6b   : > { %v507_v52 = vadd.f32 %v506_v50, %v505_v48  ;;  %p1131_p6 = pnand %p1130_p5, %p1314_p9 }
  0x6c   : > { %954 = vmatmul.msk.f32.gmra.mxu3 %vm429_vm0, %v428_v24 }
  0x6d   : > { %v515_v54 = vmul.f32 %v514_v53, %v507_v52  ;;  %p1132_p7 = pneg %p1131_p6 }
  0x6f   : > { %v516_v55 = vmul.f32 2.0, %v515_v54 }
  0x71   : > { %v529_v58 = vmul.f32 %v525_v56, %v516_v55  ;;  %v530_v0 = vmul.f32 %v526_v61, %v516_v55  ;;  %v531_v16 = vmul.f32 %v527_v9, %v516_v55  ;;  %v532_v25 = vmul.f32 %v528_v21, %v516_v55 }
  0xd9   : > { %v459_v59 = vpop.f32.mrf.mxu0 }
  0xda   : > { %v521_v60 = vsub.f32 %v517_v57, %v459_v59 }
  0xdc   : > { %v533_v62 = vadd.f32 %v529_v58, %v521_v60 }
  0xde   : > { %537 = vst [vmem:[%s1496_s9] sm:$0xff] %v533_v62  ;;  %v541_v3 = vmul.f32 %v533_v62, %v533_v62 }
  0xdf   : > { %v462_v1 = vpop.f32.mrf.mxu3 }
  0xe0   : > { %v522_v2 = vsub.f32 %v518_v63, %v462_v1 }
  0xe2   : > { %v534_v7 = vadd.f32 %v530_v0, %v522_v2 }
  0xe4   : > { %538 = vst [vmem:[%s1496_s9 + $0x8] sm:$0xff] %v534_v7  ;;  %v542_v10 = vmul.f32 %v534_v7, %v534_v7 }
  0xe6   : > { %v545_v15 = vadd.f32 %v542_v10, %v541_v3 }
  0xe7   : > { %v465_v18 = vpop.f32.mrf.mxu3 }
  0xe8   : > { %v523_v19 = vsub.f32 %v519_v12, %v465_v18 }
  0xea   : > { %v535_v20 = vadd.f32 %v531_v16, %v523_v19 }
  0xec   : > { %539 = vst [vmem:[%s1496_s9 + $0x10] sm:$0xff] %v535_v20  ;;  %v543_v22 = vmul.f32 %v535_v20, %v535_v20 }
  0xee   : > { %v546_v24 = vadd.f32 %v545_v15, %v543_v22 }
  0xef   : > { %v468_v26 = vpop.f32.mrf.mxu3 }
  0xf0   : > { %v524_v27 = vsub.f32 %v520_v23, %v468_v26 }
  0xf2   : > { %v536_v28 = vadd.f32 %v532_v25, %v524_v27 }
  0xf4   : > { %540 = vst [vmem:[%s1496_s9 + $0x18] sm:$0xff] %v536_v28  ;;  %v544_v29 = vmul.f32 %v536_v28, %v536_v28  ;;  %600 = vmatpush.msrb.mxu0 %v536_v28  ;;  %985 = vmatpush.msra.mxu1 %v536_v28  ;;  %s1133_s9 = scalar_lea.hbm %s1633_s7, 128 }
  0xf5   : > { %986 = vmatpush.msra.mxu2 %v536_v28  ;;  %p1135_p11 = scmp.lt.s32.totalorder %s1133_s9, %s1129_s22 }
  0xf6   : > { %v547_v30 = vadd.f32 %v546_v24, %v544_v29  ;;  %601 = vmatpush.msrb.mxu0 %v535_v20  ;;  %987 = vmatpush.msra.mxu1 %v535_v20 }
  0xf7   : > { %988 = vmatpush.msra.mxu2 %v535_v20  ;;  %p1136_p12 = por %p1135_p11, %p1134_p8 }
  0xf8   : > { %602 = vmatpush.msrb.mxu0 %v534_v7  ;;  %989 = vmatpush.msra.mxu1 %v534_v7 }
  0xf9   : > { %990 = vmatpush.msra.mxu2 %v534_v7  ;;  %p1137_p13 = pnand %p1136_p12, %p1132_p7 }
  0xfa   : > { %603 = vmatpush.msrb.mxu0 %v533_v62  ;;  %991 = vmatpush.msra.mxu1 %v533_v62 }
  0xfb   : > { %992 = vmatpush.msra.mxu2 %v533_v62  ;;  %963 = vmatmul.msk.f32.vlgmr.msrb.gmra.mxu0 %vm563_vm10, %v555_v31 }
  0xfc   : > { %964 = vmatmul.msk.f32.vlgmr.msra.gmra.mxu1 %vm563_vm10, %v556_v32  ;;  %967 = vmatmul.msk.f32.vlgmr.msra.gmra.mxu2 %vm563_vm10, %v559_v33 }
 0x104   : > { %965 = vmatmul.msk.f32.gmra.mxu1 %vm563_vm10, %v557_v34  ;;  %968 = vmatmul.msk.f32.gmra.mxu2 %vm563_vm10, %v560_v35 }
 0x10c   : > { %966 = vmatmul.msk.f32.gmra.mxu1 %vm563_vm10, %v558_v36  ;;  %969 = vmatmul.msk.f32.gmra.mxu2 %vm563_vm10, %v561_v37 }
 0x114   : > { %970 = vmatmul.msk.f32.gmra.mxu2 %vm563_vm10, %v562_v38 }
 0x115   : > { %1140 = shalt.err (!%p1137_p13)
}
 0x116   : > { %s1223_s11 = smov 128   ;;  %s1224_s29 = smov 512   ;;  %v548_v39 = vrot.slane %v547_v30, 4  ;;  %v660_v53 = vpop.permute.xlu0 %659  ;;  %v680_v60 = vpop.permute.xlu2 %679 }
 0x117   : > { %s1225_s12 = smov 8   ;;  %v670_v63 = vpop.permute.xlu1 %669  ;;  %s769_s26 = scalar_lea.hbm %s1632_s6, %s973_s8 }
 0x118   : > { %998 = dma.vmem_to_hbm [thread:$0]  (%p1314_p9), %s787_s18, 512, %s789_s30, %s759_s20, %s1223_s11, %s1224_s29, %s1225_s12   ;;  %v549_v40 = vadd.f32 %v548_v39, %v547_v30 }
 0x119   : > { %s1571_s18 = scalar_lea.vmem [#allocation8], %s946_s19  ;;  %s772_s20 = sshll.u32 %s769_s26, 4  ;;  %s773_s20 = int_to_ptr.hbm [resolvable:$true] %s772_s20 }
 0x11a   : > { %v550_v41 = vrot.slane %v549_v40, 2  ;;  %s770_s30 = sshll.u32 %s1571_s18, 4  ;;  %s754_s14 = scalar_lea.sflag [#allocation4], %s1377_s17  ;;  %s771_s30 = int_to_ptr.vmem [resolvable:$true] %s770_s30 }
 0x11b   : > { %s1155_s22 = sshra.s32 %s773_s20, 4  ;;  %s1161_s8 = scalar_lea.hbm %s1632_s6, 256  ;;  %s1156_s22 = int_to_ptr.hbm [resolvable:$true] %s1155_s22 }
 0x11c   : > { %v551_v42 = vadd.f32 %v550_v41, %v549_v40  ;;  %s1157_s23 = scalar_lea.hbm %s1156_s22, 64  ;;  %p1162_p3 = scmp.lt.s32.totalorder %s1156_s22, %s1632_s6 }
 0x11d   : > { %p1158_p0 = scmp.ne.s32.totalorder %s1156_s22, %s1157_s23  ;;  %p1163_p4 = scmp.lt.s32.totalorder %s1161_s8, %s1157_s23 }
 0x11e   : > { %v552_v43 = vrot.slane %v551_v42, 1  ;;  %v665_v58 = vpop.permute.xlu0 %664  ;;  %v685_v19 = vpop.permute.xlu2 %684 }
 0x11f   : > { %v675_v28 = vpop.permute.xlu1 %674  ;;  %p1159_p1 = pnand %p1158_p0, %p1314_p9  ;;  %p1164_p5 = por %p1163_p4, %p1162_p3 }
 0x120   : > { %v553_v44 = vadd.f32 %v552_v43, %v551_v42 }
 0x121   : > { %p1160_p2 = pneg %p1159_p1 }
 0x122   : > { %v554_v45 = vmul.f32 0.03125, %v553_v44 }
 0x123   : > { %p1165_p6 = pnand %p1164_p5, %p1160_p2 }
 0x124   : > { %1055 = vrsqrt.f32 %v554_v45  ;;  %vm644_vm11 = vcmp.eq.f32.partialorder %v554_v45, inf  ;;  %v647_v55 = vand.u32 2147483648, %v554_v45  ;;  %vm646_vm12 = vcmp.eq.f32.partialorder %v554_v45, 0.0 }
 0x126   : > { %v690_v35 = vpop.permute.xlu0 %689 }
 0x12a   : > { %v1056_v46 = vpop.eup %1055 }
 0x12b   : > { %v638_v47 = vmul.f32 %v1056_v46, %v554_v45 }
 0x12d   : > { %v639_v48 = vmul.f32 %v1056_v46, %v638_v47 }
 0x12f   : > { %v640_v49 = vmul.f32 0.5, %v639_v48 }
 0x131   : > { %v641_v50 = vsub.f32 1.5, %v640_v49 }
 0x133   : > { %v642_v51 = vmul.f32 %v1056_v46, %v641_v50  ;;  %v695_v50 = vpop.permute.xlu1 %694 }
 0x135   : > { %v643_v52 = vmul.f32 %v642_v51, %v554_v45 }
 0x137   : > { %v645_v54 = vsel %vm644_vm11, %v554_v45, %v643_v52 }
 0x138   : > { %v1559_v56 = vsel %vm646_vm12, %v647_v55, %v645_v54 }
 0x139   : > { %v697_v57 = vmul.f32 %v660_v53, %v1559_v56  ;;  %v698_v59 = vmul.f32 %v665_v58, %v1559_v56  ;;  %v701_v0 = vmul.f32 %v680_v60, %v1559_v56  ;;  %v699_v9 = vmul.f32 %v670_v63, %v1559_v56 }
 0x13a   : > { %v702_v26 = vmul.f32 %v685_v19, %v1559_v56  ;;  %v700_v30 = vmul.f32 %v675_v28, %v1559_v56  ;;  %v703_v41 = vmul.f32 %v690_v35, %v1559_v56  ;;  %v704_v54 = vmul.f32 %v695_v50, %v1559_v56 }
 0x13b   : > { %v705_v61 = vmax.f32 %v697_v57, 0.0  ;;  %v706_v62 = vmax.f32 %v698_v59, 0.0  ;;  %v709_v16 = vmax.f32 %v701_v0, 0.0  ;;  %v707_v21 = vmax.f32 %v699_v9, 0.0 }
 0x13c   : > { %v710_v33 = vmax.f32 %v702_v26, 0.0  ;;  %v708_v36 = vmax.f32 %v700_v30, 0.0  ;;  %v711_v47 = vmax.f32 %v703_v41, 0.0 }
 0x13d   : > { %v713_v2 = vsub.f32 0.0, %v705_v61  ;;  %v714_v10 = vsub.f32 0.0, %v706_v62  ;;  %v717_v25 = vsub.f32 0.0, %v709_v16  ;;  %v715_v29 = vsub.f32 0.0, %v707_v21 }
 0x13e   : > { %v718_v40 = vsub.f32 0.0, %v710_v33  ;;  %v716_v45 = vsub.f32 0.0, %v708_v36 }
 0x178   : > { %v605_v1 = vpop.f32.mrf.mxu0 }
 0x179   : > { %v629_v3 = vadd.f32 %v605_v1, %v1452_v17  ;;  %v608_v7 = vpop.f32.mrf.mxu1 }
 0x17a   : > { %v630_v12 = vadd.f32 %v608_v7, %v1441_v14 }
 0x17b   : > { %v721_v15 = vmax.f32 %v713_v2, %v629_v3 }
 0x17c   : > { %v722_v18 = vmax.f32 %v714_v10, %v630_v12 }
 0x17d   : > { %v729_v20 = vmin.f32 %v705_v61, %v721_v15 }
 0x17e   : > { %v730_v22 = vmin.f32 %v706_v62, %v722_v18 }
 0x17f   : > { %v737_v23 = vsub.f32 %v629_v3, %v729_v20  ;;  %v617_v24 = vpop.f32.mrf.mxu2 }
 0x180   : > { %v738_v17 = vsub.f32 %v630_v12, %v730_v22  ;;  %v633_v27 = vadd.f32 %v617_v24, %v1417_v8 }
 0x181   : > { %745 = vst [vmem:[%s1571_s18] sm:$0xff] %v737_v23  ;;  %v611_v14 = vpop.f32.mrf.mxu1 }
 0x182   : > { %746 = vst [vmem:[%s1571_s18 + $0x8] sm:$0xff] %v738_v17  ;;  %v725_v31 = vmax.f32 %v717_v25, %v633_v27  ;;  %v631_v32 = vadd.f32 %v611_v14, %v1436_v13 }
 0x184   : > { %v733_v34 = vmin.f32 %v709_v16, %v725_v31  ;;  %v723_v8 = vmax.f32 %v715_v29, %v631_v32 }
 0x186   : > { %v741_v37 = vsub.f32 %v633_v27, %v733_v34  ;;  %v731_v38 = vmin.f32 %v707_v21, %v723_v8 }
 0x187   : > { %v620_v39 = vpop.f32.mrf.mxu2 }
 0x188   : > { %749 = vst [vmem:[%s1571_s18 + $0x20] sm:$0xff] %v741_v37  ;;  %v739_v42 = vsub.f32 %v631_v32, %v731_v38  ;;  %v634_v43 = vadd.f32 %v620_v39, %v1412_v6  ;;  %v719_v6 = vsub.f32 0.0, %v711_v47 }
 0x189   : > { %v614_v44 = vpop.f32.mrf.mxu1 }
 0x18a   : > { %747 = vst [vmem:[%s1571_s18 + $0x10] sm:$0xff] %v739_v42  ;;  %v726_v13 = vmax.f32 %v718_v40, %v634_v43  ;;  %v632_v46 = vadd.f32 %v614_v44, %v1428_v11  ;;  %v712_v11 = vmax.f32 %v704_v54, 0.0 }
 0x18c   : > { %v734_v48 = vmin.f32 %v710_v33, %v726_v13  ;;  %v724_v49 = vmax.f32 %v716_v45, %v632_v46  ;;  %v720_v62 = vsub.f32 0.0, %v712_v11 }
 0x18e   : > { %v742_v51 = vsub.f32 %v634_v43, %v734_v48  ;;  %v732_v52 = vmin.f32 %v708_v36, %v724_v49 }
 0x18f   : > { %v623_v53 = vpop.f32.mrf.mxu2 }
 0x190   : > { %750 = vst [vmem:[%s1571_s18 + $0x28] sm:$0xff] %v742_v51  ;;  %v740_v55 = vsub.f32 %v632_v46, %v732_v52  ;;  %v635_v57 = vadd.f32 %v623_v53, %v1407_v5 }
 0x192   : > { %748 = vst [vmem:[%s1571_s18 + $0x18] sm:$0xff] %v740_v55  ;;  %v727_v58 = vmax.f32 %v719_v6, %v635_v57 }
 0x194   : > { %v735_v59 = vmin.f32 %v711_v47, %v727_v58 }
 0x196   : > { %v743_v60 = vsub.f32 %v635_v57, %v735_v59 }
 0x197   : > { %v626_v61 = vpop.f32.mrf.mxu2 }
 0x198   : > { %751 = vst [vmem:[%s1571_s18 + $0x30] sm:$0xff] %v743_v60  ;;  %v636_v63 = vadd.f32 %v626_v61, %v1404_v4 }
 0x19a   : > { %v728_v5 = vmax.f32 %v720_v62, %v636_v63 }
 0x19c   : > { %v736_v56 = vmin.f32 %v712_v11, %v728_v5 }
 0x19e   : > { %v744_v0 = vsub.f32 %v636_v63, %v736_v56 }
 0x1a0   : > { %752 = vst [vmem:[%s1571_s18 + $0x38] sm:$0xff] %v744_v0 }
 0x1a1   : > { %1168 = shalt.err (!%p1165_p6)
}
 0x1a2   : > { %997 = dma.vmem_to_hbm [thread:$0]  (%p1314_p9), %s771_s30, 1024, %s773_s20, %s754_s14, %s1223_s11, %s1224_s29, %s1225_s12  }
 0x1a3 PF: > { %p1008_p7 = scmp.ge.s32.totalorder %s1215_s27, 2  ;;  %s803_s21 = sand.u32 1, %s1203_s24  }
 0x1a4   : > { %s804_s18 = scalar_lea.sflag [#allocation4], %s803_s21 }
 0x1a5   : > { %p1002_p8 = pnand %p1008_p7, %p1318_p10 }
 0x1a7   : > { %p1003_p11 = pneg %p1002_p8 }
 0x1a9   : > { %1194 = dma.done.wait (%p1003_p11), %s804_s18, 1024  }
 0x1aa   : > { %1196 = vsyncadd (%p1003_p11), %s804_s18, 4294966272  ;;  %s814_s19 = scalar_lea.sflag [#allocation10], %s803_s21 }
 0x1ab   : > { %1198 = dma.done.wait (%p1003_p11), %s814_s19, 512  }
 0x1ac   : > { %1200 = vsyncadd (%p1003_p11), %s814_s19, 4294966784  ;;  %s1653_s27 = sld [smem:[#allocation16_spill]]  ;;  %s1656_s24 = smov %s1207_s25 }
 0x1ad   : > { %s1654_s13 = sld [smem:[#allocation15_spill]] }
 0x1ae   : > { %s1655_s26 = sld [smem:[#allocation17_spill]] }
 0x1b2   : > { %p27_p9 = scmp.ge.s32.totalorder %s1653_s27, 6  }
 0x1b3   : > { %s1657_s25 = smov %s1654_s13 }
 0x1b4   :  { %29 = sbr.rel (!%p27_p9) target bundleno = 9 (0x9), region = 165 }
 0x1b9   :  { %820 = vsyncpa [#allocation3], 1 }
 0x1ba   :  { %822 = vsyncpa [#allocation3 + $0x1], 1 }
 0x1bb   :  { %823 = vsyncpa [#allocation7], 1 }
 0x1bc   :  { %825 = vsyncpa [#allocation7 + $0x1], 1 }
 0x1bd   :  { %826 = vsyncpa [#allocation4], 1 }
 0x1be   :  { %828 = vsyncpa [#allocation4 + $0x1], 1 }
 0x1bf   :  { %829 = vsyncpa [#allocation10], 1 }
 0x1c0   :  { %831 = vsyncpa [#allocation10 + $0x1], 1 }

</bundles_post_ra>
